<compile_context>
chip_gen: v7x
topology: tpu7x:2x2x1
jax: 0.10.0
libtpu: 0.0.40
codegen_flags: <defaults>
</compile_context>

<pallas_src>
import jax
import jax.numpy as jnp
from jax import lax
from jax.experimental import pallas as pl
from jax.experimental.pallas import tpu as pltpu

LANE = 128       # TPU lane width
CHUNK_SUB = 8    # sublanes per in-kernel chunk (8 x 128 = 1024 samples, 1 vreg/plane)


def seggmm_kernel(
    x_ref,                                   # VMEM (Din, SUB, 128)
    w_enc_ref, b_enc_ref,                    # SMEM (Din, Dl), (1, Dl)
    w_dec_ref, b_dec_ref,                    # SMEM (Dl, Din), (1, Din)
    w_est1_ref, b_est1_ref,                  # SMEM (Dz, Dh), (1, Dh)
    w_est2_ref, b_est2_ref,                  # SMEM (Dh, Do), (1, Do)
    out_ref,                                 # VMEM (Din+Dz+Do, SUB, 128) packed [dec|z|gamma]
):
    din = x_ref.shape[0]
    dlat = w_enc_ref.shape[1]
    dz = w_est1_ref.shape[0]
    dhid = w_est1_ref.shape[1]
    dout = w_est2_ref.shape[1]
    sub = x_ref.shape[1]
    assert dz == dlat + 2
    assert sub % CHUNK_SUB == 0

    eps = jnp.float32(1e-8)
    one = jnp.float32(1.0)

    # Hoist all tiny weights/biases out of the chunk loop as SMEM scalars
    # (read once per grid step, not once per chunk).
    w_enc = [[w_enc_ref[d, l] for l in range(dlat)] for d in range(din)]
    b_enc = [b_enc_ref[0, l] for l in range(dlat)]
    w_dec = [[w_dec_ref[l, d] for d in range(din)] for l in range(dlat)]
    b_dec = [b_dec_ref[0, d] for d in range(din)]
    w1 = [[w_est1_ref[k, j] for j in range(dhid)] for k in range(dz)]
    b1 = [b_est1_ref[0, j] for j in range(dhid)]
    if dout == 2:
        # 2-class softmax == sigmoid of the logit difference; precompute diffs.
        w2d = [w_est2_ref[j, 0] - w_est2_ref[j, 1] for j in range(dhid)]
        b2d = b_est2_ref[0, 0] - b_est2_ref[0, 1]
    else:
        w2 = [[w_est2_ref[j, o] for o in range(dout)] for j in range(dhid)]
        b2 = [b_est2_ref[0, o] for o in range(dout)]

    num_chunks = sub // CHUNK_SUB

    # Strip-mine the big tile so per-chunk live planes stay ~15 vregs.
    @pl.loop(0, num_chunks)
    def _(c):
        s0 = pl.multiple_of(c * CHUNK_SUB, CHUNK_SUB)
        rows = pl.ds(s0, CHUNK_SUB)

        # Lane/sublane-dense per-feature planes of samples: each (CHUNK_SUB, 128).
        xs = [x_ref[d, rows, :] for d in range(din)]

        # --- encoder: enc_l = sum_d x_d * W_enc[d,l] + b_enc[l] (VPU scalar-broadcast MACs)
        encs = []
        for l in range(dlat):
            acc = xs[0] * w_enc[0][l]
            for d in range(1, din):
                acc = acc + xs[d] * w_enc[d][l]
            encs.append(acc + b_enc[l])

        # --- decoder: dec_d = sum_l enc_l * W_dec[l,d] + b_dec[d]
        decs = []
        for d in range(din):
            acc = encs[0] * w_dec[0][d]
            for l in range(1, dlat):
                acc = acc + encs[l] * w_dec[l][d]
            decs.append(acc + b_dec[d])

        # --- reconstruction features: elementwise along lanes, no cross-lane reductions
        dot_xd = xs[0] * decs[0]
        sq_x = xs[0] * xs[0]
        sq_d = decs[0] * decs[0]
        df = xs[0] - decs[0]
        sq_df = df * df
        for d in range(1, din):
            dot_xd = dot_xd + xs[d] * decs[d]
            sq_x = sq_x + xs[d] * xs[d]
            sq_d = sq_d + decs[d] * decs[d]
            df = xs[d] - decs[d]
            sq_df = sq_df + df * df

        # cosine: merged norm sqrt(sq_x*sq_d); exact divide (tightens gamma/z parity)
        rec_cos = dot_xd / jnp.maximum(jnp.sqrt(sq_x * sq_d), eps)
        # relative euclidean distance: no eps (matches torch; all-zero row -> inf)
        rec_euc = jnp.sqrt(sq_df) * lax.rsqrt(sq_x)

        # z rows = [enc..., rec_euclidean, rec_cosine] -- no concatenate needed.
        zs = encs + [rec_euc, rec_cos]

        # --- estimation net, fused: Linear(Dz,Dh) -> tanh -> (dropout=identity) -> Linear -> softmax
        # TODO(synk): training-mode dropout (p=0.5) not implemented; eval-mode identity used.
        if dout == 2:
            dlogit = None
            for j in range(dhid):
                a = zs[0] * w1[0][j]
                for k in range(1, dz):
                    a = a + zs[k] * w1[k][j]
                h = jnp.tanh(a + b1[j])           # consumed immediately, never materialized
                t = h * w2d[j]
                dlogit = t if dlogit is None else dlogit + t
            dlogit = dlogit + b2d
            g0 = one / (one + jnp.exp(-dlogit))   # exact sigmoid == 2-class softmax
            gammas = [g0, one - g0]
        else:
            accs = [None] * dout
            for j in range(dhid):
                a = zs[0] * w1[0][j]
                for k in range(1, dz):
                    a = a + zs[k] * w1[k][j]
                h = jnp.tanh(a + b1[j])
                for o in range(dout):
                    t = h * w2[j][o]
                    accs[o] = t if accs[o] is None else accs[o] + t
            logits = [accs[o] + b2[o] for o in range(dout)]
            m = logits[0]
            for o in range(1, dout):
                m = jnp.maximum(m, logits[o])
            es = [jnp.exp(lg - m) for lg in logits]
            den = es[0]
            for o in range(1, dout):
                den = den + es[o]
            inv = one / den
            gammas = [e * inv for e in es]

        # --- lane-dense packed stores: feature planes [dec | z | gamma]
        for d in range(din):
            out_ref[d, rows, :] = decs[d]
        for r in range(dz):
            out_ref[din + r, rows, :] = zs[r]
        for o in range(dout):
            out_ref[din + dz + o, rows, :] = gammas[o]


def seggmm_forward(x, params, *, tile_n=8192):
    """x: [N, input_dim] float32.  Returns (enc, dec, z, gamma) as [N, feat] arrays."""
    n, input_dim = x.shape

    w_enc, b_enc = params["w_enc"], params["b_enc"]
    w_dec, b_dec = params["w_dec"], params["b_dec"]
    w_est1, b_est1 = params["w_est1"], params["b_est1"]
    w_est2, b_est2 = params["w_est2"], params["b_est2"]

    latent_dim = w_enc.shape[1]
    output_dim = w_est2.shape[1]
    z_dim = latent_dim + 2
    assert w_est1.shape[0] == z_dim
    feat_total = input_dim + z_dim + output_dim

    # Tile size must be a multiple of 1024 (8 sublanes x 128 lanes); clamp to
    # the (padded) problem size so small inputs don't over-pad.
    tile_n = max(1024, (tile_n // 1024) * 1024)
    n_ceil = ((n + 1023) // 1024) * 1024
    tile_n = min(tile_n, n_ceil)

    n_tiles = (n + tile_n - 1) // tile_n
    n_pad = n_tiles * tile_n
    sub = tile_n // LANE

    # Pad the sample axis (pad value 1.0 keeps the padded math finite); rows sliced off after.
    xp = x if n_pad == n else jnp.pad(x, ((0, n_pad - n), (0, 0)), constant_values=1.0)

    # Samples onto lanes, grid axis outermost: [N, Din] -> [tiles, Din, sub, 128].
    xt = jnp.transpose(xp.reshape(n_tiles, sub, LANE, input_dim), (0, 3, 1, 2))

    smem_spec = pl.BlockSpec(memory_space=pltpu.MemorySpace.SMEM)
    x_spec = pl.BlockSpec((None, input_dim, sub, LANE), lambda i: (i, 0, 0, 0))
    out_spec = pl.BlockSpec((None, feat_total, sub, LANE), lambda i: (i, 0, 0, 0))

    grid_spec = pltpu.PrefetchScalarGridSpec(
        num_scalar_prefetch=0,
        grid=(n_tiles,),
        in_specs=[x_spec] + [smem_spec] * 8,
        out_specs=out_spec,
    )

    fn = pl.pallas_call(
        seggmm_kernel,
        out_shape=jax.ShapeDtypeStruct((n_tiles, feat_total, sub, LANE), jnp.float32),
        grid_spec=grid_spec,
        compiler_params=pltpu.CompilerParams(
            dimension_semantics=("parallel",),
        ),
    )
    out_p = fn(xt, w_enc, b_enc, w_dec, b_dec, w_est1, b_est1, w_est2, b_est2)

    # Single transpose pass back to row-major [N, feat_total]; then cheap column slices.
    flat = jnp.transpose(out_p, (0, 2, 3, 1)).reshape(n_pad, feat_total)[:n]
    dec = flat[:, :input_dim]
    z = flat[:, input_dim:input_dim + z_dim]
    gamma = flat[:, input_dim + z_dim:]
    enc = z[:, :latent_dim]
    return enc, dec, z, gamma


def init_params(key, input_dim=2, latent_dim=1, estimation_dim=3,
                est_hidden=10, output_dim=2):
    """Deterministic PyTorch-Linear-style init (uniform(-1/sqrt(fan_in), +))."""
    def linear(key, fan_in, fan_out):
        kw, kb = jax.random.split(key)
        bound = 1.0 / jnp.sqrt(jnp.float32(fan_in))
        w = jax.random.uniform(kw, (fan_in, fan_out), jnp.float32, -bound, bound)
        b = jax.random.uniform(kb, (1, fan_out), jnp.float32, -bound, bound)
        return w, b

    k1, k2, k3, k4 = jax.random.split(key, 4)
    w_enc, b_enc = linear(k1, input_dim, latent_dim)
    w_dec, b_dec = linear(k2, latent_dim, input_dim)
    w_est1, b_est1 = linear(k3, estimation_dim, est_hidden)
    w_est2, b_est2 = linear(k4, est_hidden, output_dim)
    return dict(w_enc=w_enc, b_enc=b_enc,
                w_dec=w_dec, b_dec=b_dec,
                w_est1=w_est1, b_est1=b_est1,
                w_est2=w_est2, b_est2=b_est2)


def seggmm_forward_ref(x, p):
    """Plain-JAX reference for correctness checking."""
    enc = x @ p["w_enc"] + p["b_enc"]
    dec = enc @ p["w_dec"] + p["b_dec"]
    eps = 1e-8
    dot_xd = jnp.sum(x * dec, axis=1, keepdims=True)
    nx = jnp.sqrt(jnp.sum(x * x, axis=1, keepdims=True))
    nd = jnp.sqrt(jnp.sum(dec * dec, axis=1, keepdims=True))
    cos = dot_xd / jnp.maximum(nx * nd, eps)
    eu = jnp.sqrt(jnp.sum((x - dec) ** 2, axis=1, keepdims=True)) / nx
    z = jnp.concatenate([enc, eu, cos], axis=1)
    h = jnp.tanh(z @ p["w_est1"] + p["b_est1"])
    logits = h @ p["w_est2"] + p["b_est2"]
    gamma = jax.nn.softmax(logits, axis=1)
    return enc, dec, z, gamma


if __name__ == "__main__":
    key = jax.random.PRNGKey(0)
    k_params, k_x = jax.random.split(key)

    # 8192 samples, tile of 1024 rows -> 8 "parallel" grid steps: even and >=6,
    # so v7x's two TensorCores each get 4 pipelined steps.  For large batches
    # the default tile_n=8192 amortizes per-step overhead via in-kernel chunking.
    N, INPUT_DIM = 8192, 2
    params = init_params(k_params, input_dim=INPUT_DIM)
    x = jax.random.normal(k_x, (N, INPUT_DIM), jnp.float32)

    enc, dec, z, gamma = seggmm_forward(x, params, tile_n=1024)
    jax.block_until_ready((enc, dec, z, gamma))

    # sanity check against pure-JAX reference (exact reciprocals used -> tight tolerances)
    enc_r, dec_r, z_r, gamma_r = seggmm_forward_ref(x, params)
    assert jnp.allclose(enc, enc_r, atol=1e-5, rtol=1e-5), "enc mismatch vs reference"
    assert jnp.allclose(dec, dec_r, atol=1e-5, rtol=1e-5), "dec mismatch vs reference"
    assert jnp.allclose(z, z_r, atol=1e-4, rtol=1e-4), "z mismatch vs reference"
    assert jnp.allclose(gamma, gamma_r, atol=1e-4, rtol=1e-4), "gamma mismatch vs reference"

    print("KERNEL_OK")
</pallas_src>

<mosaic_0001>
module attributes {stable_mosaic.version = 11 : i64} {
  func.func @seggmm_kernel(%arg0: i32, %arg1: memref<1x2x8x128xf32, #tpu.memory_space<vmem>>, %arg2: memref<2x1xf32, #tpu.memory_space<smem>>, %arg3: memref<1x1xf32, #tpu.memory_space<smem>>, %arg4: memref<1x2xf32, #tpu.memory_space<smem>>, %arg5: memref<1x2xf32, #tpu.memory_space<smem>>, %arg6: memref<3x10xf32, #tpu.memory_space<smem>>, %arg7: memref<1x10xf32, #tpu.memory_space<smem>>, %arg8: memref<10x2xf32, #tpu.memory_space<smem>>, %arg9: memref<1x2xf32, #tpu.memory_space<smem>>, %arg10: memref<1x7x8x128xf32, #tpu.memory_space<vmem>>) attributes {dimension_semantics = [#tpu.dimension_semantics<parallel>], iteration_bounds = array<i64: 8>, scalar_prefetch = 0 : i64, scratch_operands = 0 : i64, tpu.core_type = #tpu.core_type<tc>, window_params = [{transform_indices = @transform_0, window_bounds = array<i64: 1, 2, 8, 128>}, {transform_indices = @transform_1, window_bounds = array<i64: 2, 1>}, {transform_indices = @transform_2, window_bounds = array<i64: 1, 1>}, {transform_indices = @transform_3, window_bounds = array<i64: 1, 2>}, {transform_indices = @transform_4, window_bounds = array<i64: 1, 2>}, {transform_indices = @transform_5, window_bounds = array<i64: 3, 10>}, {transform_indices = @transform_6, window_bounds = array<i64: 1, 10>}, {transform_indices = @transform_7, window_bounds = array<i64: 10, 2>}, {transform_indices = @transform_8, window_bounds = array<i64: 1, 2>}, {transform_indices = @transform_9, window_bounds = array<i64: 1, 7, 8, 128>}]} {
    %c0 = arith.constant 0 : index
    %c0_0 = arith.constant 0 : index
    %0 = memref.load %arg2[%c0, %c0_0] : memref<2x1xf32, #tpu.memory_space<smem>>
    %c1 = arith.constant 1 : index
    %c0_1 = arith.constant 0 : index
    %1 = memref.load %arg2[%c1, %c0_1] : memref<2x1xf32, #tpu.memory_space<smem>>
    %c0_2 = arith.constant 0 : index
    %c0_3 = arith.constant 0 : index
    %2 = memref.load %arg3[%c0_2, %c0_3] : memref<1x1xf32, #tpu.memory_space<smem>>
    %c0_4 = arith.constant 0 : index
    %c0_5 = arith.constant 0 : index
    %3 = memref.load %arg4[%c0_4, %c0_5] : memref<1x2xf32, #tpu.memory_space<smem>>
    %c0_6 = arith.constant 0 : index
    %c1_7 = arith.constant 1 : index
    %4 = memref.load %arg4[%c0_6, %c1_7] : memref<1x2xf32, #tpu.memory_space<smem>>
    %c0_8 = arith.constant 0 : index
    %c0_9 = arith.constant 0 : index
    %5 = memref.load %arg5[%c0_8, %c0_9] : memref<1x2xf32, #tpu.memory_space<smem>>
    %c0_10 = arith.constant 0 : index
    %c1_11 = arith.constant 1 : index
    %6 = memref.load %arg5[%c0_10, %c1_11] : memref<1x2xf32, #tpu.memory_space<smem>>
    %c0_12 = arith.constant 0 : index
    %c0_13 = arith.constant 0 : index
    %7 = memref.load %arg6[%c0_12, %c0_13] : memref<3x10xf32, #tpu.memory_space<smem>>
    %c0_14 = arith.constant 0 : index
    %c1_15 = arith.constant 1 : index
    %8 = memref.load %arg6[%c0_14, %c1_15] : memref<3x10xf32, #tpu.memory_space<smem>>
    %c0_16 = arith.constant 0 : index
    %c2 = arith.constant 2 : index
    %9 = memref.load %arg6[%c0_16, %c2] : memref<3x10xf32, #tpu.memory_space<smem>>
    %c0_17 = arith.constant 0 : index
    %c3 = arith.constant 3 : index
    %10 = memref.load %arg6[%c0_17, %c3] : memref<3x10xf32, #tpu.memory_space<smem>>
    %c0_18 = arith.constant 0 : index
    %c4 = arith.constant 4 : index
    %11 = memref.load %arg6[%c0_18, %c4] : memref<3x10xf32, #tpu.memory_space<smem>>
    %c0_19 = arith.constant 0 : index
    %c5 = arith.constant 5 : index
    %12 = memref.load %arg6[%c0_19, %c5] : memref<3x10xf32, #tpu.memory_space<smem>>
    %c0_20 = arith.constant 0 : index
    %c6 = arith.constant 6 : index
    %13 = memref.load %arg6[%c0_20, %c6] : memref<3x10xf32, #tpu.memory_space<smem>>
    %c0_21 = arith.constant 0 : index
    %c7 = arith.constant 7 : index
    %14 = memref.load %arg6[%c0_21, %c7] : memref<3x10xf32, #tpu.memory_space<smem>>
    %c0_22 = arith.constant 0 : index
    %c8 = arith.constant 8 : index
    %15 = memref.load %arg6[%c0_22, %c8] : memref<3x10xf32, #tpu.memory_space<smem>>
    %c0_23 = arith.constant 0 : index
    %c9 = arith.constant 9 : index
    %16 = memref.load %arg6[%c0_23, %c9] : memref<3x10xf32, #tpu.memory_space<smem>>
    %c1_24 = arith.constant 1 : index
    %c0_25 = arith.constant 0 : index
    %17 = memref.load %arg6[%c1_24, %c0_25] : memref<3x10xf32, #tpu.memory_space<smem>>
    %c1_26 = arith.constant 1 : index
    %c1_27 = arith.constant 1 : index
    %18 = memref.load %arg6[%c1_26, %c1_27] : memref<3x10xf32, #tpu.memory_space<smem>>
    %c1_28 = arith.constant 1 : index
    %c2_29 = arith.constant 2 : index
    %19 = memref.load %arg6[%c1_28, %c2_29] : memref<3x10xf32, #tpu.memory_space<smem>>
    %c1_30 = arith.constant 1 : index
    %c3_31 = arith.constant 3 : index
    %20 = memref.load %arg6[%c1_30, %c3_31] : memref<3x10xf32, #tpu.memory_space<smem>>
    %c1_32 = arith.constant 1 : index
    %c4_33 = arith.constant 4 : index
    %21 = memref.load %arg6[%c1_32, %c4_33] : memref<3x10xf32, #tpu.memory_space<smem>>
    %c1_34 = arith.constant 1 : index
    %c5_35 = arith.constant 5 : index
    %22 = memref.load %arg6[%c1_34, %c5_35] : memref<3x10xf32, #tpu.memory_space<smem>>
    %c1_36 = arith.constant 1 : index
    %c6_37 = arith.constant 6 : index
    %23 = memref.load %arg6[%c1_36, %c6_37] : memref<3x10xf32, #tpu.memory_space<smem>>
    %c1_38 = arith.constant 1 : index
    %c7_39 = arith.constant 7 : index
    %24 = memref.load %arg6[%c1_38, %c7_39] : memref<3x10xf32, #tpu.memory_space<smem>>
    %c1_40 = arith.constant 1 : index
    %c8_41 = arith.constant 8 : index
    %25 = memref.load %arg6[%c1_40, %c8_41] : memref<3x10xf32, #tpu.memory_space<smem>>
    %c1_42 = arith.constant 1 : index
    %c9_43 = arith.constant 9 : index
    %26 = memref.load %arg6[%c1_42, %c9_43] : memref<3x10xf32, #tpu.memory_space<smem>>
    %c2_44 = arith.constant 2 : index
    %c0_45 = arith.constant 0 : index
    %27 = memref.load %arg6[%c2_44, %c0_45] : memref<3x10xf32, #tpu.memory_space<smem>>
    %c2_46 = arith.constant 2 : index
    %c1_47 = arith.constant 1 : index
    %28 = memref.load %arg6[%c2_46, %c1_47] : memref<3x10xf32, #tpu.memory_space<smem>>
    %c2_48 = arith.constant 2 : index
    %c2_49 = arith.constant 2 : index
    %29 = memref.load %arg6[%c2_48, %c2_49] : memref<3x10xf32, #tpu.memory_space<smem>>
    %c2_50 = arith.constant 2 : index
    %c3_51 = arith.constant 3 : index
    %30 = memref.load %arg6[%c2_50, %c3_51] : memref<3x10xf32, #tpu.memory_space<smem>>
    %c2_52 = arith.constant 2 : index
    %c4_53 = arith.constant 4 : index
    %31 = memref.load %arg6[%c2_52, %c4_53] : memref<3x10xf32, #tpu.memory_space<smem>>
    %c2_54 = arith.constant 2 : index
    %c5_55 = arith.constant 5 : index
    %32 = memref.load %arg6[%c2_54, %c5_55] : memref<3x10xf32, #tpu.memory_space<smem>>
    %c2_56 = arith.constant 2 : index
    %c6_57 = arith.constant 6 : index
    %33 = memref.load %arg6[%c2_56, %c6_57] : memref<3x10xf32, #tpu.memory_space<smem>>
    %c2_58 = arith.constant 2 : index
    %c7_59 = arith.constant 7 : index
    %34 = memref.load %arg6[%c2_58, %c7_59] : memref<3x10xf32, #tpu.memory_space<smem>>
    %c2_60 = arith.constant 2 : index
    %c8_61 = arith.constant 8 : index
    %35 = memref.load %arg6[%c2_60, %c8_61] : memref<3x10xf32, #tpu.memory_space<smem>>
    %c2_62 = arith.constant 2 : index
    %c9_63 = arith.constant 9 : index
    %36 = memref.load %arg6[%c2_62, %c9_63] : memref<3x10xf32, #tpu.memory_space<smem>>
    %c0_64 = arith.constant 0 : index
    %c0_65 = arith.constant 0 : index
    %37 = memref.load %arg7[%c0_64, %c0_65] : memref<1x10xf32, #tpu.memory_space<smem>>
    %c0_66 = arith.constant 0 : index
    %c1_67 = arith.constant 1 : index
    %38 = memref.load %arg7[%c0_66, %c1_67] : memref<1x10xf32, #tpu.memory_space<smem>>
    %c0_68 = arith.constant 0 : index
    %c2_69 = arith.constant 2 : index
    %39 = memref.load %arg7[%c0_68, %c2_69] : memref<1x10xf32, #tpu.memory_space<smem>>
    %c0_70 = arith.constant 0 : index
    %c3_71 = arith.constant 3 : index
    %40 = memref.load %arg7[%c0_70, %c3_71] : memref<1x10xf32, #tpu.memory_space<smem>>
    %c0_72 = arith.constant 0 : index
    %c4_73 = arith.constant 4 : index
    %41 = memref.load %arg7[%c0_72, %c4_73] : memref<1x10xf32, #tpu.memory_space<smem>>
    %c0_74 = arith.constant 0 : index
    %c5_75 = arith.constant 5 : index
    %42 = memref.load %arg7[%c0_74, %c5_75] : memref<1x10xf32, #tpu.memory_space<smem>>
    %c0_76 = arith.constant 0 : index
    %c6_77 = arith.constant 6 : index
    %43 = memref.load %arg7[%c0_76, %c6_77] : memref<1x10xf32, #tpu.memory_space<smem>>
    %c0_78 = arith.constant 0 : index
    %c7_79 = arith.constant 7 : index
    %44 = memref.load %arg7[%c0_78, %c7_79] : memref<1x10xf32, #tpu.memory_space<smem>>
    %c0_80 = arith.constant 0 : index
    %c8_81 = arith.constant 8 : index
    %45 = memref.load %arg7[%c0_80, %c8_81] : memref<1x10xf32, #tpu.memory_space<smem>>
    %c0_82 = arith.constant 0 : index
    %c9_83 = arith.constant 9 : index
    %46 = memref.load %arg7[%c0_82, %c9_83] : memref<1x10xf32, #tpu.memory_space<smem>>
    %c0_84 = arith.constant 0 : index
    %c0_85 = arith.constant 0 : index
    %47 = memref.load %arg8[%c0_84, %c0_85] : memref<10x2xf32, #tpu.memory_space<smem>>
    %c0_86 = arith.constant 0 : index
    %c1_87 = arith.constant 1 : index
    %48 = memref.load %arg8[%c0_86, %c1_87] : memref<10x2xf32, #tpu.memory_space<smem>>
    %49 = arith.subf %47, %48 : f32
    %c1_88 = arith.constant 1 : index
    %c0_89 = arith.constant 0 : index
    %50 = memref.load %arg8[%c1_88, %c0_89] : memref<10x2xf32, #tpu.memory_space<smem>>
    %c1_90 = arith.constant 1 : index
    %c1_91 = arith.constant 1 : index
    %51 = memref.load %arg8[%c1_90, %c1_91] : memref<10x2xf32, #tpu.memory_space<smem>>
    %52 = arith.subf %50, %51 : f32
    %c2_92 = arith.constant 2 : index
    %c0_93 = arith.constant 0 : index
    %53 = memref.load %arg8[%c2_92, %c0_93] : memref<10x2xf32, #tpu.memory_space<smem>>
    %c2_94 = arith.constant 2 : index
    %c1_95 = arith.constant 1 : index
    %54 = memref.load %arg8[%c2_94, %c1_95] : memref<10x2xf32, #tpu.memory_space<smem>>
    %55 = arith.subf %53, %54 : f32
    %c3_96 = arith.constant 3 : index
    %c0_97 = arith.constant 0 : index
    %56 = memref.load %arg8[%c3_96, %c0_97] : memref<10x2xf32, #tpu.memory_space<smem>>
    %c3_98 = arith.constant 3 : index
    %c1_99 = arith.constant 1 : index
    %57 = memref.load %arg8[%c3_98, %c1_99] : memref<10x2xf32, #tpu.memory_space<smem>>
    %58 = arith.subf %56, %57 : f32
    %c4_100 = arith.constant 4 : index
    %c0_101 = arith.constant 0 : index
    %59 = memref.load %arg8[%c4_100, %c0_101] : memref<10x2xf32, #tpu.memory_space<smem>>
    %c4_102 = arith.constant 4 : index
    %c1_103 = arith.constant 1 : index
    %60 = memref.load %arg8[%c4_102, %c1_103] : memref<10x2xf32, #tpu.memory_space<smem>>
    %61 = arith.subf %59, %60 : f32
    %c5_104 = arith.constant 5 : index
    %c0_105 = arith.constant 0 : index
    %62 = memref.load %arg8[%c5_104, %c0_105] : memref<10x2xf32, #tpu.memory_space<smem>>
    %c5_106 = arith.constant 5 : index
    %c1_107 = arith.constant 1 : index
    %63 = memref.load %arg8[%c5_106, %c1_107] : memref<10x2xf32, #tpu.memory_space<smem>>
    %64 = arith.subf %62, %63 : f32
    %c6_108 = arith.constant 6 : index
    %c0_109 = arith.constant 0 : index
    %65 = memref.load %arg8[%c6_108, %c0_109] : memref<10x2xf32, #tpu.memory_space<smem>>
    %c6_110 = arith.constant 6 : index
    %c1_111 = arith.constant 1 : index
    %66 = memref.load %arg8[%c6_110, %c1_111] : memref<10x2xf32, #tpu.memory_space<smem>>
    %67 = arith.subf %65, %66 : f32
    %c7_112 = arith.constant 7 : index
    %c0_113 = arith.constant 0 : index
    %68 = memref.load %arg8[%c7_112, %c0_113] : memref<10x2xf32, #tpu.memory_space<smem>>
    %c7_114 = arith.constant 7 : index
    %c1_115 = arith.constant 1 : index
    %69 = memref.load %arg8[%c7_114, %c1_115] : memref<10x2xf32, #tpu.memory_space<smem>>
    %70 = arith.subf %68, %69 : f32
    %c8_116 = arith.constant 8 : index
    %c0_117 = arith.constant 0 : index
    %71 = memref.load %arg8[%c8_116, %c0_117] : memref<10x2xf32, #tpu.memory_space<smem>>
    %c8_118 = arith.constant 8 : index
    %c1_119 = arith.constant 1 : index
    %72 = memref.load %arg8[%c8_118, %c1_119] : memref<10x2xf32, #tpu.memory_space<smem>>
    %73 = arith.subf %71, %72 : f32
    %c9_120 = arith.constant 9 : index
    %c0_121 = arith.constant 0 : index
    %74 = memref.load %arg8[%c9_120, %c0_121] : memref<10x2xf32, #tpu.memory_space<smem>>
    %c9_122 = arith.constant 9 : index
    %c1_123 = arith.constant 1 : index
    %75 = memref.load %arg8[%c9_122, %c1_123] : memref<10x2xf32, #tpu.memory_space<smem>>
    %76 = arith.subf %74, %75 : f32
    %c0_124 = arith.constant 0 : index
    %c0_125 = arith.constant 0 : index
    %77 = memref.load %arg9[%c0_124, %c0_125] : memref<1x2xf32, #tpu.memory_space<smem>>
    %c0_126 = arith.constant 0 : index
    %c1_127 = arith.constant 1 : index
    %78 = memref.load %arg9[%c0_126, %c1_127] : memref<1x2xf32, #tpu.memory_space<smem>>
    %79 = arith.subf %77, %78 : f32
    %cst = arith.constant 9.99999993E-9 : f32
    %cst_128 = arith.constant 1.000000e+00 : f32
    %c0_i32 = arith.constant 0 : i32
    %c1_i32 = arith.constant 1 : i32
    %80 = arith.muli %c0_i32, %c1_i32 : i32
    %c0_i32_129 = arith.constant 0 : i32
    %81 = arith.addi %c0_i32_129, %80 : i32
    %c8_i32 = arith.constant 8 : i32
    %82 = arith.muli %81, %c8_i32 : i32
    %83 = tpu.assume_multiple %82, 8 : i32
    %c0_130 = arith.constant 0 : index
    %c0_131 = arith.constant 0 : index
    %84 = arith.index_cast %83 : i32 to index
    %c0_132 = arith.constant 0 : index
    %85 = vector.load %arg1[%c0_130, %c0_131, %84, %c0_132] : memref<1x2x8x128xf32, #tpu.memory_space<vmem>>, vector<1x1x8x128xf32>
    %86 = vector.shape_cast %85 : vector<1x1x8x128xf32> to vector<8x128xf32>
    %c0_133 = arith.constant 0 : index
    %c1_134 = arith.constant 1 : index
    %87 = arith.index_cast %83 : i32 to index
    %c0_135 = arith.constant 0 : index
    %88 = vector.load %arg1[%c0_133, %c1_134, %87, %c0_135] : memref<1x2x8x128xf32, #tpu.memory_space<vmem>>, vector<1x1x8x128xf32>
    %89 = vector.shape_cast %88 : vector<1x1x8x128xf32> to vector<8x128xf32>
    %90 = vector.broadcast %0 : f32 to vector<8x128xf32>
    %91 = arith.mulf %86, %90 : vector<8x128xf32>
    %92 = vector.broadcast %1 : f32 to vector<8x128xf32>
    %93 = arith.mulf %89, %92 : vector<8x128xf32>
    %94 = arith.addf %91, %93 : vector<8x128xf32>
    %95 = vector.broadcast %2 : f32 to vector<8x128xf32>
    %96 = arith.addf %94, %95 : vector<8x128xf32>
    %97 = vector.broadcast %3 : f32 to vector<8x128xf32>
    %98 = arith.mulf %96, %97 : vector<8x128xf32>
    %99 = vector.broadcast %5 : f32 to vector<8x128xf32>
    %100 = arith.addf %98, %99 : vector<8x128xf32>
    %101 = vector.broadcast %4 : f32 to vector<8x128xf32>
    %102 = arith.mulf %96, %101 : vector<8x128xf32>
    %103 = vector.broadcast %6 : f32 to vector<8x128xf32>
    %104 = arith.addf %102, %103 : vector<8x128xf32>
    %105 = arith.mulf %86, %100 : vector<8x128xf32>
    %106 = arith.mulf %86, %86 : vector<8x128xf32>
    %107 = arith.mulf %100, %100 : vector<8x128xf32>
    %108 = arith.subf %86, %100 : vector<8x128xf32>
    %109 = arith.mulf %108, %108 : vector<8x128xf32>
    %110 = arith.mulf %89, %104 : vector<8x128xf32>
    %111 = arith.addf %105, %110 : vector<8x128xf32>
    %112 = arith.mulf %89, %89 : vector<8x128xf32>
    %113 = arith.addf %106, %112 : vector<8x128xf32>
    %114 = arith.mulf %104, %104 : vector<8x128xf32>
    %115 = arith.addf %107, %114 : vector<8x128xf32>
    %116 = arith.subf %89, %104 : vector<8x128xf32>
    %117 = arith.mulf %116, %116 : vector<8x128xf32>
    %118 = arith.addf %109, %117 : vector<8x128xf32>
    %119 = arith.mulf %113, %115 : vector<8x128xf32>
    %120 = math.sqrt %119 : vector<8x128xf32>
    %121 = vector.broadcast %cst : f32 to vector<8x128xf32>
    %122 = arith.maximumf %120, %121 : vector<8x128xf32>
    %123 = arith.divf %111, %122 : vector<8x128xf32>
    %124 = math.sqrt %118 : vector<8x128xf32>
    %125 = math.rsqrt %113 : vector<8x128xf32>
    %126 = arith.mulf %124, %125 : vector<8x128xf32>
    %127 = vector.broadcast %7 : f32 to vector<8x128xf32>
    %128 = arith.mulf %96, %127 : vector<8x128xf32>
    %129 = vector.broadcast %17 : f32 to vector<8x128xf32>
    %130 = arith.mulf %126, %129 : vector<8x128xf32>
    %131 = arith.addf %128, %130 : vector<8x128xf32>
    %132 = vector.broadcast %27 : f32 to vector<8x128xf32>
    %133 = arith.mulf %123, %132 : vector<8x128xf32>
    %134 = arith.addf %131, %133 : vector<8x128xf32>
    %135 = vector.broadcast %37 : f32 to vector<8x128xf32>
    %136 = arith.addf %134, %135 : vector<8x128xf32>
    %137 = math.tanh %136 : vector<8x128xf32>
    %138 = vector.broadcast %49 : f32 to vector<8x128xf32>
    %139 = arith.mulf %137, %138 : vector<8x128xf32>
    %140 = vector.broadcast %8 : f32 to vector<8x128xf32>
    %141 = arith.mulf %96, %140 : vector<8x128xf32>
    %142 = vector.broadcast %18 : f32 to vector<8x128xf32>
    %143 = arith.mulf %126, %142 : vector<8x128xf32>
    %144 = arith.addf %141, %143 : vector<8x128xf32>
    %145 = vector.broadcast %28 : f32 to vector<8x128xf32>
    %146 = arith.mulf %123, %145 : vector<8x128xf32>
    %147 = arith.addf %144, %146 : vector<8x128xf32>
    %148 = vector.broadcast %38 : f32 to vector<8x128xf32>
    %149 = arith.addf %147, %148 : vector<8x128xf32>
    %150 = math.tanh %149 : vector<8x128xf32>
    %151 = vector.broadcast %52 : f32 to vector<8x128xf32>
    %152 = arith.mulf %150, %151 : vector<8x128xf32>
    %153 = arith.addf %139, %152 : vector<8x128xf32>
    %154 = vector.broadcast %9 : f32 to vector<8x128xf32>
    %155 = arith.mulf %96, %154 : vector<8x128xf32>
    %156 = vector.broadcast %19 : f32 to vector<8x128xf32>
    %157 = arith.mulf %126, %156 : vector<8x128xf32>
    %158 = arith.addf %155, %157 : vector<8x128xf32>
    %159 = vector.broadcast %29 : f32 to vector<8x128xf32>
    %160 = arith.mulf %123, %159 : vector<8x128xf32>
    %161 = arith.addf %158, %160 : vector<8x128xf32>
    %162 = vector.broadcast %39 : f32 to vector<8x128xf32>
    %163 = arith.addf %161, %162 : vector<8x128xf32>
    %164 = math.tanh %163 : vector<8x128xf32>
    %165 = vector.broadcast %55 : f32 to vector<8x128xf32>
    %166 = arith.mulf %164, %165 : vector<8x128xf32>
    %167 = arith.addf %153, %166 : vector<8x128xf32>
    %168 = vector.broadcast %10 : f32 to vector<8x128xf32>
    %169 = arith.mulf %96, %168 : vector<8x128xf32>
    %170 = vector.broadcast %20 : f32 to vector<8x128xf32>
    %171 = arith.mulf %126, %170 : vector<8x128xf32>
    %172 = arith.addf %169, %171 : vector<8x128xf32>
    %173 = vector.broadcast %30 : f32 to vector<8x128xf32>
    %174 = arith.mulf %123, %173 : vector<8x128xf32>
    %175 = arith.addf %172, %174 : vector<8x128xf32>
    %176 = vector.broadcast %40 : f32 to vector<8x128xf32>
    %177 = arith.addf %175, %176 : vector<8x128xf32>
    %178 = math.tanh %177 : vector<8x128xf32>
    %179 = vector.broadcast %58 : f32 to vector<8x128xf32>
    %180 = arith.mulf %178, %179 : vector<8x128xf32>
    %181 = arith.addf %167, %180 : vector<8x128xf32>
    %182 = vector.broadcast %11 : f32 to vector<8x128xf32>
    %183 = arith.mulf %96, %182 : vector<8x128xf32>
    %184 = vector.broadcast %21 : f32 to vector<8x128xf32>
    %185 = arith.mulf %126, %184 : vector<8x128xf32>
    %186 = arith.addf %183, %185 : vector<8x128xf32>
    %187 = vector.broadcast %31 : f32 to vector<8x128xf32>
    %188 = arith.mulf %123, %187 : vector<8x128xf32>
    %189 = arith.addf %186, %188 : vector<8x128xf32>
    %190 = vector.broadcast %41 : f32 to vector<8x128xf32>
    %191 = arith.addf %189, %190 : vector<8x128xf32>
    %192 = math.tanh %191 : vector<8x128xf32>
    %193 = vector.broadcast %61 : f32 to vector<8x128xf32>
    %194 = arith.mulf %192, %193 : vector<8x128xf32>
    %195 = arith.addf %181, %194 : vector<8x128xf32>
    %196 = vector.broadcast %12 : f32 to vector<8x128xf32>
    %197 = arith.mulf %96, %196 : vector<8x128xf32>
    %198 = vector.broadcast %22 : f32 to vector<8x128xf32>
    %199 = arith.mulf %126, %198 : vector<8x128xf32>
    %200 = arith.addf %197, %199 : vector<8x128xf32>
    %201 = vector.broadcast %32 : f32 to vector<8x128xf32>
    %202 = arith.mulf %123, %201 : vector<8x128xf32>
    %203 = arith.addf %200, %202 : vector<8x128xf32>
    %204 = vector.broadcast %42 : f32 to vector<8x128xf32>
    %205 = arith.addf %203, %204 : vector<8x128xf32>
    %206 = math.tanh %205 : vector<8x128xf32>
    %207 = vector.broadcast %64 : f32 to vector<8x128xf32>
    %208 = arith.mulf %206, %207 : vector<8x128xf32>
    %209 = arith.addf %195, %208 : vector<8x128xf32>
    %210 = vector.broadcast %13 : f32 to vector<8x128xf32>
    %211 = arith.mulf %96, %210 : vector<8x128xf32>
    %212 = vector.broadcast %23 : f32 to vector<8x128xf32>
    %213 = arith.mulf %126, %212 : vector<8x128xf32>
    %214 = arith.addf %211, %213 : vector<8x128xf32>
    %215 = vector.broadcast %33 : f32 to vector<8x128xf32>
    %216 = arith.mulf %123, %215 : vector<8x128xf32>
    %217 = arith.addf %214, %216 : vector<8x128xf32>
    %218 = vector.broadcast %43 : f32 to vector<8x128xf32>
    %219 = arith.addf %217, %218 : vector<8x128xf32>
    %220 = math.tanh %219 : vector<8x128xf32>
    %221 = vector.broadcast %67 : f32 to vector<8x128xf32>
    %222 = arith.mulf %220, %221 : vector<8x128xf32>
    %223 = arith.addf %209, %222 : vector<8x128xf32>
    %224 = vector.broadcast %14 : f32 to vector<8x128xf32>
    %225 = arith.mulf %96, %224 : vector<8x128xf32>
    %226 = vector.broadcast %24 : f32 to vector<8x128xf32>
    %227 = arith.mulf %126, %226 : vector<8x128xf32>
    %228 = arith.addf %225, %227 : vector<8x128xf32>
    %229 = vector.broadcast %34 : f32 to vector<8x128xf32>
    %230 = arith.mulf %123, %229 : vector<8x128xf32>
    %231 = arith.addf %228, %230 : vector<8x128xf32>
    %232 = vector.broadcast %44 : f32 to vector<8x128xf32>
    %233 = arith.addf %231, %232 : vector<8x128xf32>
    %234 = math.tanh %233 : vector<8x128xf32>
    %235 = vector.broadcast %70 : f32 to vector<8x128xf32>
    %236 = arith.mulf %234, %235 : vector<8x128xf32>
    %237 = arith.addf %223, %236 : vector<8x128xf32>
    %238 = vector.broadcast %15 : f32 to vector<8x128xf32>
    %239 = arith.mulf %96, %238 : vector<8x128xf32>
    %240 = vector.broadcast %25 : f32 to vector<8x128xf32>
    %241 = arith.mulf %126, %240 : vector<8x128xf32>
    %242 = arith.addf %239, %241 : vector<8x128xf32>
    %243 = vector.broadcast %35 : f32 to vector<8x128xf32>
    %244 = arith.mulf %123, %243 : vector<8x128xf32>
    %245 = arith.addf %242, %244 : vector<8x128xf32>
    %246 = vector.broadcast %45 : f32 to vector<8x128xf32>
    %247 = arith.addf %245, %246 : vector<8x128xf32>
    %248 = math.tanh %247 : vector<8x128xf32>
    %249 = vector.broadcast %73 : f32 to vector<8x128xf32>
    %250 = arith.mulf %248, %249 : vector<8x128xf32>
    %251 = arith.addf %237, %250 : vector<8x128xf32>
    %252 = vector.broadcast %16 : f32 to vector<8x128xf32>
    %253 = arith.mulf %96, %252 : vector<8x128xf32>
    %254 = vector.broadcast %26 : f32 to vector<8x128xf32>
    %255 = arith.mulf %126, %254 : vector<8x128xf32>
    %256 = arith.addf %253, %255 : vector<8x128xf32>
    %257 = vector.broadcast %36 : f32 to vector<8x128xf32>
    %258 = arith.mulf %123, %257 : vector<8x128xf32>
    %259 = arith.addf %256, %258 : vector<8x128xf32>
    %260 = vector.broadcast %46 : f32 to vector<8x128xf32>
    %261 = arith.addf %259, %260 : vector<8x128xf32>
    %262 = math.tanh %261 : vector<8x128xf32>
    %263 = vector.broadcast %76 : f32 to vector<8x128xf32>
    %264 = arith.mulf %262, %263 : vector<8x128xf32>
    %265 = arith.addf %251, %264 : vector<8x128xf32>
    %266 = vector.broadcast %79 : f32 to vector<8x128xf32>
    %267 = arith.addf %265, %266 : vector<8x128xf32>
    %cst_136 = arith.constant 0.000000e+00 : f32
    %268 = vector.broadcast %cst_136 : f32 to vector<8x128xf32>
    %269 = arith.subf %268, %267 : vector<8x128xf32>
    %270 = math.exp %269 : vector<8x128xf32>
    %271 = vector.broadcast %cst_128 : f32 to vector<8x128xf32>
    %272 = arith.addf %271, %270 : vector<8x128xf32>
    %273 = vector.broadcast %cst_128 : f32 to vector<8x128xf32>
    %274 = arith.divf %273, %272 : vector<8x128xf32>
    %275 = vector.broadcast %cst_128 : f32 to vector<8x128xf32>
    %276 = arith.subf %275, %274 : vector<8x128xf32>
    %c0_137 = arith.constant 0 : index
    %c0_138 = arith.constant 0 : index
    %277 = arith.index_cast %83 : i32 to index
    %c0_139 = arith.constant 0 : index
    %278 = vector.load %arg10[%c0_137, %c0_138, %277, %c0_139] : memref<1x7x8x128xf32, #tpu.memory_space<vmem>>, vector<1x1x8x128xf32>
    %279 = vector.shape_cast %278 : vector<1x1x8x128xf32> to vector<8x128xf32>
    %280 = vector.shape_cast %100 : vector<8x128xf32> to vector<1x1x8x128xf32>
    tpu.vector_store %arg10[%c0_137, %c0_138, %277, %c0_139], %280 {strides = array<i32>} : memref<1x7x8x128xf32, #tpu.memory_space<vmem>>, vector<1x1x8x128xf32>,
    %c0_140 = arith.constant 0 : index
    %c1_141 = arith.constant 1 : index
    %281 = arith.index_cast %83 : i32 to index
    %c0_142 = arith.constant 0 : index
    %282 = vector.load %arg10[%c0_140, %c1_141, %281, %c0_142] : memref<1x7x8x128xf32, #tpu.memory_space<vmem>>, vector<1x1x8x128xf32>
    %283 = vector.shape_cast %282 : vector<1x1x8x128xf32> to vector<8x128xf32>
    %284 = vector.shape_cast %104 : vector<8x128xf32> to vector<1x1x8x128xf32>
    tpu.vector_store %arg10[%c0_140, %c1_141, %281, %c0_142], %284 {strides = array<i32>} : memref<1x7x8x128xf32, #tpu.memory_space<vmem>>, vector<1x1x8x128xf32>,
    %c0_143 = arith.constant 0 : index
    %c2_144 = arith.constant 2 : index
    %285 = arith.index_cast %83 : i32 to index
    %c0_145 = arith.constant 0 : index
    %286 = vector.load %arg10[%c0_143, %c2_144, %285, %c0_145] : memref<1x7x8x128xf32, #tpu.memory_space<vmem>>, vector<1x1x8x128xf32>
    %287 = vector.shape_cast %286 : vector<1x1x8x128xf32> to vector<8x128xf32>
    %288 = vector.shape_cast %96 : vector<8x128xf32> to vector<1x1x8x128xf32>
    tpu.vector_store %arg10[%c0_143, %c2_144, %285, %c0_145], %288 {strides = array<i32>} : memref<1x7x8x128xf32, #tpu.memory_space<vmem>>, vector<1x1x8x128xf32>,
    %c0_146 = arith.constant 0 : index
    %c3_147 = arith.constant 3 : index
    %289 = arith.index_cast %83 : i32 to index
    %c0_148 = arith.constant 0 : index
    %290 = vector.load %arg10[%c0_146, %c3_147, %289, %c0_148] : memref<1x7x8x128xf32, #tpu.memory_space<vmem>>, vector<1x1x8x128xf32>
    %291 = vector.shape_cast %290 : vector<1x1x8x128xf32> to vector<8x128xf32>
    %292 = vector.shape_cast %126 : vector<8x128xf32> to vector<1x1x8x128xf32>
    tpu.vector_store %arg10[%c0_146, %c3_147, %289, %c0_148], %292 {strides = array<i32>} : memref<1x7x8x128xf32, #tpu.memory_space<vmem>>, vector<1x1x8x128xf32>,
    %c0_149 = arith.constant 0 : index
    %c4_150 = arith.constant 4 : index
    %293 = arith.index_cast %83 : i32 to index
    %c0_151 = arith.constant 0 : index
    %294 = vector.load %arg10[%c0_149, %c4_150, %293, %c0_151] : memref<1x7x8x128xf32, #tpu.memory_space<vmem>>, vector<1x1x8x128xf32>
    %295 = vector.shape_cast %294 : vector<1x1x8x128xf32> to vector<8x128xf32>
    %296 = vector.shape_cast %123 : vector<8x128xf32> to vector<1x1x8x128xf32>
    tpu.vector_store %arg10[%c0_149, %c4_150, %293, %c0_151], %296 {strides = array<i32>} : memref<1x7x8x128xf32, #tpu.memory_space<vmem>>, vector<1x1x8x128xf32>,
    %c0_152 = arith.constant 0 : index
    %c5_153 = arith.constant 5 : index
    %297 = arith.index_cast %83 : i32 to index
    %c0_154 = arith.constant 0 : index
    %298 = vector.load %arg10[%c0_152, %c5_153, %297, %c0_154] : memref<1x7x8x128xf32, #tpu.memory_space<vmem>>, vector<1x1x8x128xf32>
    %299 = vector.shape_cast %298 : vector<1x1x8x128xf32> to vector<8x128xf32>
    %300 = vector.shape_cast %274 : vector<8x128xf32> to vector<1x1x8x128xf32>
    tpu.vector_store %arg10[%c0_152, %c5_153, %297, %c0_154], %300 {strides = array<i32>} : memref<1x7x8x128xf32, #tpu.memory_space<vmem>>, vector<1x1x8x128xf32>,
    %c0_155 = arith.constant 0 : index
    %c6_156 = arith.constant 6 : index
    %301 = arith.index_cast %83 : i32 to index
    %c0_157 = arith.constant 0 : index
    %302 = vector.load %arg10[%c0_155, %c6_156, %301, %c0_157] : memref<1x7x8x128xf32, #tpu.memory_space<vmem>>, vector<1x1x8x128xf32>
    %303 = vector.shape_cast %302 : vector<1x1x8x128xf32> to vector<8x128xf32>
    %304 = vector.shape_cast %276 : vector<8x128xf32> to vector<1x1x8x128xf32>
    tpu.vector_store %arg10[%c0_155, %c6_156, %301, %c0_157], %304 {strides = array<i32>} : memref<1x7x8x128xf32, #tpu.memory_space<vmem>>, vector<1x1x8x128xf32>,
    %c1_i32_158 = arith.constant 1 : i32
    return
  }
  func.func @transform_0(%arg0: i32) -> (i32, i32, i32, i32) {
    %c0_i32 = arith.constant 0 : i32
    %c0_i32_0 = arith.constant 0 : i32
    %c0_i32_1 = arith.constant 0 : i32
    %c0_i32_2 = arith.constant 0 : i32
    return %arg0, %c0_i32, %c0_i32_0, %c0_i32_1 : i32, i32, i32, i32
  }
  func.func @transform_1(%arg0: i32) -> (i32, i32) {
    %c0_i32 = arith.constant 0 : i32
    %c0_i32_0 = arith.constant 0 : i32
    %c0_i32_1 = arith.constant 0 : i32
    return %c0_i32, %c0_i32_0 : i32, i32
  }
  func.func @transform_2(%arg0: i32) -> (i32, i32) {
    %c0_i32 = arith.constant 0 : i32
    %c0_i32_0 = arith.constant 0 : i32
    %c0_i32_1 = arith.constant 0 : i32
    return %c0_i32, %c0_i32_0 : i32, i32
  }
  func.func @transform_3(%arg0: i32) -> (i32, i32) {
    %c0_i32 = arith.constant 0 : i32
    %c0_i32_0 = arith.constant 0 : i32
    %c0_i32_1 = arith.constant 0 : i32
    return %c0_i32, %c0_i32_0 : i32, i32
  }
  func.func @transform_4(%arg0: i32) -> (i32, i32) {
    %c0_i32 = arith.constant 0 : i32
    %c0_i32_0 = arith.constant 0 : i32
    %c0_i32_1 = arith.constant 0 : i32
    return %c0_i32, %c0_i32_0 : i32, i32
  }
  func.func @transform_5(%arg0: i32) -> (i32, i32) {
    %c0_i32 = arith.constant 0 : i32
    %c0_i32_0 = arith.constant 0 : i32
    %c0_i32_1 = arith.constant 0 : i32
    return %c0_i32, %c0_i32_0 : i32, i32
  }
  func.func @transform_6(%arg0: i32) -> (i32, i32) {
    %c0_i32 = arith.constant 0 : i32
    %c0_i32_0 = arith.constant 0 : i32
    %c0_i32_1 = arith.constant 0 : i32
    return %c0_i32, %c0_i32_0 : i32, i32
  }
  func.func @transform_7(%arg0: i32) -> (i32, i32) {
    %c0_i32 = arith.constant 0 : i32
    %c0_i32_0 = arith.constant 0 : i32
    %c0_i32_1 = arith.constant 0 : i32
    return %c0_i32, %c0_i32_0 : i32, i32
  }
  func.func @transform_8(%arg0: i32) -> (i32, i32) {
    %c0_i32 = arith.constant 0 : i32
    %c0_i32_0 = arith.constant 0 : i32
    %c0_i32_1 = arith.constant 0 : i32
    return %c0_i32, %c0_i32_0 : i32, i32
  }
  func.func @transform_9(%arg0: i32) -> (i32, i32, i32, i32) {
    %c0_i32 = arith.constant 0 : i32
    %c0_i32_0 = arith.constant 0 : i32
    %c0_i32_1 = arith.constant 0 : i32
    %c0_i32_2 = arith.constant 0 : i32
    return %arg0, %c0_i32, %c0_i32_0, %c0_i32_1 : i32, i32, i32, i32
  }
}

</mosaic_0001>

<bundles_post_ra>
// kernel: tpu_custom_call.1
= control target key start
LH: loop header
LB: loop body
LE: loop exit
PB: predicated region body
PF: predicated region fallthrough
CT: control target
= control target key end

     0   :  { %s1957_s0 = inlined_call_operand.hbm [shape: f32[8,2,8,128], index: 0, kind: input, shape index: {}]   ;;  %s1958_s1 = inlined_call_operand.vmem [shape: f32[2,1], index: 1, kind: input, shape index: {}]   ;;  %s1959_s2 = inlined_call_operand.<no memory space> [shape: f32[1,1], index: 2, kind: input, shape index: {}]   ;;  %s1960_s3 = inlined_call_operand.vmem [shape: f32[1,2], index: 3, kind: input, shape index: {}]   ;;  %s1961_s4 = inlined_call_operand.vmem [shape: f32[1,2], index: 4, kind: input, shape index: {}]   ;;  %s1962_s5 = inlined_call_operand.vmem [shape: f32[3,10], index: 5, kind: input, shape index: {}]   ;;  %s1963_s6 = inlined_call_operand.vmem [shape: f32[1,10], index: 6, kind: input, shape index: {}]   ;;  %s1964_s7 = inlined_call_operand.vmem [shape: f32[10,2], index: 7, kind: input, shape index: {}]   ;;  %s1965_s8 = inlined_call_operand.vmem [shape: f32[1,2], index: 8, kind: input, shape index: {}]   ;;  %s1966_s9 = inlined_call_operand.hbm [shape: f32[8,7,8,128], index: 9, kind: output, shape index: {}]  }
   0x1   :  { %1980 = sst [smem:[#allocation31_spill]] %s1957_s0 }
   0x2   :  { %1981 = sst [smem:[#allocation32_spill]] %s1958_s1 }
   0x3   :  { %1982 = sst [smem:[#allocation33_spill]] %s1960_s3 }
   0x4   :  { %1983 = sst [smem:[#allocation34_spill]] %s1961_s4 }
   0x5   :  { %1984 = sst [smem:[#allocation35_spill]] %s1962_s5 }
   0x6   :  { %1985 = sst [smem:[#allocation36_spill]] %s1963_s6 }
   0x7   :  { %1986 = sst [smem:[#allocation37_spill]] %s1964_s7 }
   0x8   :  { %1987 = sst [smem:[#allocation38_spill]] %s1965_s8 }
   0x9   :  { %1988 = sst [smem:[#allocation39_spill]] %s1966_s9 }
   0xa   :  { %14 = sst [smem:[#allocation2]] %s1959_s2 }
   0xb   :  { %15 = vsyncpa [#allocation4], 0 }
   0xc   :  { %17 = vsyncpa [#allocation4 + $0x1], 0 }
   0xd   :  { %18 = vsyncpa [#allocation6], 0 }
   0xe   :  { %19 = vsyncpa [#allocation9], 0 }
   0xf   :  { %20 = vsyncpa [#allocation12], 0 }
  0x10   :  { %21 = vsyncpa [#allocation15], 0 }
  0x11   :  { %22 = vsyncpa [#allocation5], 0 }
  0x12   :  { %24 = vsyncpa [#allocation5 + $0x1], 0  ;;  %s1439_s11 = smov 0   ;;  %s1441_s12 = smov 0  }
  0x13   :  { %s1443_s13 = smov 0   ;;  %s1445_s14 = smov 0  }
  0x14 LB: > { %1989 = sst [smem:[#allocation24_spill]] %s1359_s11  ;;  %s1993_s3 = sld [smem:[#allocation33_spill]]  ;;  %s1371_s14 = sphi %s1445_s14, %s2029_s14   ;;  %s1367_s13 = sphi %s1443_s13, %s2032_s13   ;;  %s1363_s12 = sphi %s1441_s12, %s2031_s12   ;;  %s1359_s11 = sphi %s1439_s11, %s2030_s11  }
  0x15   : > { %1990 = sst [smem:[#allocation25_spill]] %s1363_s12  ;;  %s1463_s17 = sadd.s32 4294967295, %s1371_s14  }
  0x16   : > { %1991 = sst [smem:[#allocation26_spill]] %s1367_s13  ;;  %p906_p0 = scmp.ge.s32.totalorder %s1371_s14, 1 }
  0x17   : > { %1992 = sst [smem:[#allocation27_spill]] %s1371_s14  ;;  %p1967_p1 = scmp.eq.s32.totalorder %s1463_s17, 0 }
  0x18   : > { %p255_p2 = scmp.lt.s32.totalorder %s1371_s14, 9  ;;  %s1995_s5 = sld [smem:[#allocation35_spill]] }
  0x19   : > { %s1996_s7 = sld [smem:[#allocation37_spill]]  ;;  %s1998_s1 = sld [smem:[#allocation32_spill]] }
  0x1a   : > { %s282_s16 = sshll.u32 %s1993_s3, 4  ;;  %p1468_p3 = pnand %p906_p0, %p255_p2  ;;  %s283_s16 = int_to_ptr.vmem [resolvable:$true] %s282_s16 }
  0x1b   : > { %s1154_s29 = scalar_lea.vmem %s283_s16, 16  ;;  %p1162_p10 = scmp.lt.s32.totalorder %s283_s16, %s283_s16 }
  0x1c   : > { %s1994_s18 = scalar_select %p1468_p3, 1, 0 }
  0x1d   : > { %p1033_p4 = pneg %p1468_p3  ;;  %p1155_p6 = scmp.ne.s32.totalorder %s283_s16, %s1154_s29 }
  0x1e   : > { %s304_s21 = sshll.u32 %s1995_s5, 4  ;;  %p1163_p11 = scmp.lt.s32.totalorder %s1154_s29, %s1154_s29  ;;  %s305_s21 = int_to_ptr.vmem [resolvable:$true] %s304_s21 }
  0x1f   : > { %s325_s24 = sshll.u32 %s1996_s7, 4  ;;  %p1482_p5 = pnand %p1033_p4, %p1967_p1  ;;  %s1486_s24 = int_to_ptr.vmem [resolvable:$true] %s325_s24 }
  0x20   : > { %s268_s28 = sshll.u32 %s1998_s1, 4  ;;  %p1164_p12 = por %p1163_p11, %p1162_p10  ;;  %s269_s28 = int_to_ptr.vmem [resolvable:$true] %s268_s28 }
  0x21   : > { %p1493_p7 = pneg %p1482_p5 }
  0x23   : > { %p1157_p8 = pnand %p1493_p7, %p1155_p6 }
  0x25   : > { %p1158_p9 = pneg %p1157_p8 }
  0x27   : > { %p1165_p13 = pnand %p1164_p12, %p1158_p9 }
  0x29   : > { %1168 = shalt.err (!%p1165_p13)
}
  0x2a   : > { %s1373_s10 = smov [#allocation8]   ;;  %s1169_s2 = scalar_lea.vmem %s305_s21, 64 }
  0x2b   : > { %1039 = dma.vmem_to_smem (!%p1482_p5), %s283_s16, 16, %s1373_s10, [#allocation9]  }
  0x2c   : > { %p1170_p0 = scmp.ne.s32.totalorder %s305_s21, %s1169_s2  ;;  %p1177_p1 = scmp.lt.s32.totalorder %s305_s21, %s305_s21 }
  0x2d   : > { %p1178_p3 = scmp.lt.s32.totalorder %s1169_s2, %s1169_s2 }
  0x2e   : > { %p1172_p2 = pnand %p1170_p0, %p1493_p7 }
  0x2f   : > { %p1179_p6 = por %p1178_p3, %p1177_p1 }
  0x30   : > { %p1173_p4 = pneg %p1172_p2 }
  0x32   : > { %p1180_p8 = pnand %p1179_p6, %p1173_p4 }
  0x34   : > { %1183 = shalt.err (!%p1180_p8)
}
  0x35   : > { %s1374_s15 = smov [#allocation11]   ;;  %s1184_s19 = scalar_lea.vmem %s1486_s24, 256 }
  0x36   : > { %1045 = dma.vmem_to_smem (!%p1482_p5), %s305_s21, 64, %s1374_s15, [#allocation12]  }
  0x37   : > { %p1185_p9 = scmp.ne.s32.totalorder %s1486_s24, %s1184_s19  ;;  %p1192_p12 = scmp.lt.s32.totalorder %s1486_s24, %s1486_s24 }
  0x38   : > { %p1193_p13 = scmp.lt.s32.totalorder %s1184_s19, %s1184_s19 }
  0x39   : > { %p1187_p10 = pnand %p1185_p9, %p1493_p7 }
  0x3a   : > { %p1194_p0 = por %p1193_p13, %p1192_p12 }
  0x3b   : > { %p1188_p11 = pneg %p1187_p10 }
  0x3d   : > { %p1195_p1 = pnand %p1194_p0, %p1188_p11 }
  0x3f   : > { %1198 = shalt.err (!%p1195_p1)
}
  0x40   : > { %s1375_s16 = smov [#allocation14]   ;;  %s1969_s20 = smov 128  }
  0x41   : > { %s1970_s22 = smov 8   ;;  %s1199_s26 = scalar_lea.vmem %s269_s28, 32 }
  0x42   : > { %1051 = dma.vmem_to_smem (!%p1482_p5), %s1486_s24, 256, %s1375_s16, [#allocation15], %s1969_s20, %s1969_s20, %s1970_s22  }
  0x43   : > { %p1200_p3 = scmp.ne.s32.totalorder %s269_s28, %s1199_s26  ;;  %p1207_p6 = scmp.lt.s32.totalorder %s269_s28, %s269_s28 }
  0x44   : > { %p1208_p8 = scmp.lt.s32.totalorder %s1199_s26, %s1199_s26 }
  0x45   : > { %p1202_p2 = pnand %p1200_p3, %p1493_p7 }
  0x46   : > { %p1209_p9 = por %p1208_p8, %p1207_p6 }
  0x47   : > { %p1203_p4 = pneg %p1202_p2 }
  0x49   : > { %p1210_p10 = pnand %p1209_p9, %p1203_p4 }
  0x4b   : > { %1213 = shalt.err (!%p1210_p10)
}
  0x4c   : > { %s1378_s27 = smov [#allocation7]   ;;  %s2000_s4 = sld [smem:[#allocation34_spill]] }
  0x4d   : > { %1036 = dma.vmem_to_smem (!%p1482_p5), %s269_s28, 32, %s1378_s27, [#allocation6]  }
  0x4e   : > { %s2001_s6 = sld [smem:[#allocation36_spill]] }
  0x52   : > { %s293_s10 = sshll.u32 %s2000_s4, 4  ;;  %s294_s10 = int_to_ptr.vmem [resolvable:$true] %s293_s10 }
  0x53   : > { %s1214_s16 = scalar_lea.vmem %s294_s10, 16  ;;  %p1222_p0 = scmp.lt.s32.totalorder %s294_s10, %s294_s10 }
  0x54   : > { %s315_s19 = sshll.u32 %s2001_s6, 4  ;;  %p1215_p11 = scmp.ne.s32.totalorder %s294_s10, %s1214_s16  ;;  %s316_s19 = int_to_ptr.vmem [resolvable:$true] %s315_s19 }
  0x55   : > { %p1223_p1 = scmp.lt.s32.totalorder %s1214_s16, %s1214_s16 }
  0x56   : > { %p1217_p12 = pnand %p1215_p11, %p1493_p7 }
  0x57   : > { %p1224_p3 = por %p1223_p1, %p1222_p0 }
  0x58   : > { %p1218_p13 = pneg %p1217_p12 }
  0x5a   : > { %p1225_p2 = pnand %p1224_p3, %p1218_p13 }
  0x5c   : > { %1228 = shalt.err (!%p1225_p2)
}
  0x5d   : > { %s1379_s28 = smov [#allocation10]   ;;  %s1229_s21 = scalar_lea.vmem %s316_s19, 16 }
  0x5e   : > { %1042 = dma.vmem_to_smem (!%p1482_p5), %s294_s10, 16, %s1379_s28, [#allocation9]  }
  0x5f   : > { %p1230_p4 = scmp.ne.s32.totalorder %s316_s19, %s1229_s21  ;;  %p1237_p9 = scmp.lt.s32.totalorder %s316_s19, %s316_s19 }
  0x60   : > { %p1238_p10 = scmp.lt.s32.totalorder %s1229_s21, %s1229_s21 }
  0x61   : > { %p1232_p6 = pnand %p1230_p4, %p1493_p7 }
  0x62   : > { %p1239_p11 = por %p1238_p10, %p1237_p9 }
  0x63   : > { %p1233_p8 = pneg %p1232_p6 }
  0x65   : > { %p1240_p12 = pnand %p1239_p11, %p1233_p8 }
  0x67   : > { %1243 = shalt.err (!%p1240_p12)
}
  0x68   : > { %s1380_s23 = smov [#allocation13]   ;;  %s2002_s8 = sld [smem:[#allocation38_spill]] }
  0x69   : > { %1048 = dma.vmem_to_smem (!%p1482_p5), %s316_s19, 16, %s1380_s23, [#allocation12]  }
  0x6e   : > { %s339_s24 = sshll.u32 %s2002_s8, 4  ;;  %s340_s24 = int_to_ptr.vmem [resolvable:$true] %s339_s24 }
  0x6f   : > { %s1244_s29 = scalar_lea.vmem %s340_s24, 16  ;;  %p1252_p3 = scmp.lt.s32.totalorder %s340_s24, %s340_s24 }
  0x70   : > { %p1245_p13 = scmp.ne.s32.totalorder %s340_s24, %s1244_s29  ;;  %p1253_p2 = scmp.lt.s32.totalorder %s1244_s29, %s1244_s29 }
  0x72   : > { %p1247_p0 = pnand %p1245_p13, %p1493_p7  ;;  %p1254_p4 = por %p1253_p2, %p1252_p3 }
  0x74   : > { %p1248_p1 = pneg %p1247_p0 }
  0x76   : > { %p1255_p6 = pnand %p1254_p4, %p1248_p1 }
  0x78   : > { %1258 = shalt.err (!%p1255_p6)
}
  0x79   : > { %s1381_s10 = smov [#allocation16]   ;;  %s905_s30 = sadd.s32 4294967294, %s1371_s14  }
  0x7a   : > { %1054 = dma.vmem_to_smem (!%p1482_p5), %s340_s24, 16, %s1381_s10, [#allocation15]  }
  0x7b   : > { %s1548_s2 = sadd.s32 1, %s1371_s14   ;;  %s37_s25 = sadd.s32 1, %s1367_s13 }
  0x7c   : > { %2003 = sst [smem:[#allocation28_spill]] %s1548_s2  ;;  %s34_s15 = ssub.s32 %s1371_s14, %s1548_s2 }
  0x7d   : > { %p44_p7 = scmp.ne.s32.totalorder %s1367_s13, %s1363_s12  ;;  %p35_p8 = scmp.eq.s32.totalorder %s34_s15, 0 }
  0x7e   : > { %p45_p9 = scmp.eq.s32.totalorder %s1371_s14, 0  ;;  %p50_p10 = scmp.ne.s32.totalorder %s1363_s12, %s1359_s11 }
  0x7f   : > { %p242_p11 = scmp.eq.s32.totalorder %s1463_s17, 7  ;;  %p2005_p13 = scmp.eq.s32.totalorder %s1463_s17, 0 }
  0x80   : > { %s1560_s19 = scalar_select %p35_p8, %s1367_s13, %s37_s25  }
  0x81   : > { %p46_p12 = por %p45_p9, %p44_p7  ;;  %p1564_p0 = por %p2005_p13, %p50_p10 }
  0x82   : > { %2004 = sst [smem:[#allocation29_spill]] %s1560_s19  ;;  %p1568_p5 = por %p242_p11, %p44_p7 }
  0x83   : > { %p248_p1 = scmp.eq.s32.totalorder %s905_s30, 7  ;;  %p1070_p3 = scmp.lt.s32.totalorder %s1371_s14, 8 }
  0x84   : > { %s2007_s28 = scalar_select %p1568_p5, 1, 0 }
  0x85   : > { %s350_s21 = sand.u32 1, %s1367_s13   ;;  %p1574_p2 = por %p248_p1, %p50_p10 }
  0x86   : > { %s915_s26 = sshll.u32 %s350_s21, 4  ;;  %s998_s27 = sshll.u32 %s1371_s14, 8 }
  0x87   : > { %s2008_s23 = scalar_select %p1574_p2, 1, 0 }
  0x88   : > { %s2010_s0 = sld [smem:[#allocation31_spill]]  ;;  %s354_s25 = scalar_lea.vmem [#allocation3], %s915_s26 }
  0x89   : > { %2009 = sst [smem:[#allocation30_spill]] %s2008_s23  ;;  %s361_s15 = sshll.u32 %s354_s25, 4  ;;  %s1588_s15 = int_to_ptr.vmem [resolvable:$true] %s361_s15 }
  0x8a   : > { %p1584_p4 = pnand %p1070_p3, %p46_p12  ;;  %s1590_s20 = scalar_lea.sflag [#allocation4], %s350_s21 }
  0x8c   : > { %p1261_p7 = pneg %p1584_p4 }
  0x8e   : > { %s1582_s10 = scalar_lea.hbm %s2010_s0, %s998_s27  ;;  %s1264_s24 = scalar_lea.hbm %s2010_s0, 2048 }
  0x8f   : > { %s1259_s22 = scalar_lea.hbm %s1582_s10, 256  ;;  %p1265_p10 = scmp.lt.u32.totalorder %s1582_s10, %s2010_s0 }
  0x90   : > { %p1260_p6 = scmp.ne.s32.totalorder %s1582_s10, %s1259_s22  ;;  %p1266_p11 = scmp.lt.u32.totalorder %s1264_s24, %s1259_s22 }
  0x91   : > { %p1268_p13 = scmp.lt.u32.totalorder %s1259_s22, %s1582_s10 }
  0x92   : > { %p1262_p8 = pnand %p1261_p7, %p1260_p6  ;;  %p1267_p12 = por %p1266_p11, %p1265_p10 }
  0x94   : > { %p1263_p9 = pneg %p1262_p8  ;;  %p1269_p1 = por %p1268_p13, %p1267_p12 }
  0x96   : > { %p1270_p3 = pnand %p1269_p1, %p1263_p9 }
  0x98   : > { %1273 = shalt.err (!%p1270_p3)
}
  0x99   : > { %s1274_s21 = scalar_lea.vmem %s1588_s15, 256  ;;  %s1382_s26 = smov [#allocation3]  }
  0x9a   : > { %p1275_p6 = scmp.ne.s32.totalorder %s1588_s15, %s1274_s21  ;;  %s1279_s27 = sshll.u32 %s1382_s26, 4  ;;  %s1280_s27 = int_to_ptr.vmem [resolvable:$false] %s1279_s27 }
  0x9b   : > { %s1281_s29 = scalar_lea.vmem %s1280_s27, 512  ;;  %p1282_p5 = scmp.lt.s32.totalorder %s1588_s15, %s1280_s27 }
  0x9c   : > { %p1277_p8 = pnand %p1275_p6, %p1261_p7  ;;  %p1283_p10 = scmp.lt.s32.totalorder %s1281_s29, %s1274_s21 }
  0x9e   : > { %p1278_p2 = pneg %p1277_p8  ;;  %p1284_p11 = por %p1283_p10, %p1282_p5 }
  0xa0   : > { %p1285_p12 = pnand %p1284_p11, %p1278_p2 }
  0xa2   : > { %1288 = shalt.err (!%p1285_p12)
}
  0xa3   : > { %s2012_s22 = smov 8   ;;  %s2013_s24 = smov 128  }
  0xa4   : > { %1058 = dma.hbm_to_vmem [thread:$0]  (!%p1584_p4), %s1582_s10, 256, %s1588_s15, %s1590_s20, %s2013_s24, %s2013_s24, %s2012_s22  }
  0xa5   : > { %p2014_p7 = scmp.ne.s32.totalorder %s1994_s18, 0 }
  0xa6   : > { %s1624_s25 = sand.u32 (!%p2014_p7), 1, %s1363_s12  }
  0xa7   : > { %373 = sbr.rel (%p2014_p7) target bundleno = 330 (0x14a), region = 56  ;;  %s919_s21 = sshll.u32 (!%p2014_p7), %s1624_s25, 4 }
  0xa8   : > { %s376_s26 = scalar_lea.sflag (!%p2014_p7), [#allocation4], %s1624_s25  ;;  %s379_s27 = scalar_lea.vmem (!%p2014_p7), [#allocation3], %s919_s21 }
  0xae   : > { %1334 = dma.done.wait (%p1564_p0), %s376_s26, 256  }
  0xaf   : > { %1336 = vsyncadd (%p1564_p0), %s376_s26, 4294967040  ;;  %p2015_p5 = scmp.eq.s32.totalorder %s1463_s17, 0 }
  0xb1   : > { %1338 = dma.done.wait (%p2015_p5), [#allocation6], 32   ;;  %p2016_p2 = pmov %p2015_p5 }
  0xb3   : > { %1340 = vsyncadd (%p2016_p2), [#allocation6], 4294967264  ;;  %p2017_p4 = pmov %p2016_p2 }
  0xb4   : > { %p2018_p9 = pmov %p2016_p2 }
  0xb5   : > { %1342 = dma.done.wait (%p2017_p4), [#allocation9], 32  }
  0xb6   : > { %1344 = vsyncadd (%p2018_p9), [#allocation9], 4294967264  ;;  %p2019_p13 = pmov %p2016_p2 }
  0xb7   : > { %p2020_p1 = pmov %p2016_p2 }
  0xb8   : > { %1346 = dma.done.wait (%p2019_p13), [#allocation12], 80  }
  0xb9   : > { %1348 = vsyncadd (%p2020_p1), [#allocation12], 4294967216  ;;  %p2021_p0 = pmov %p2020_p1 }
  0xbb   : > { %1350 = dma.done.wait (%p2021_p0), [#allocation15], 272   ;;  %p2022_p3 = pmov %p2021_p0 }
  0xbd   : > { %1352 = vsyncadd (%p2022_p3), [#allocation15], 4294967024 }
  0xbe   : > { %412 = sfence }
  0xbf   : > { %s443_s18 = sld [smem:[#allocation7]]  ;;  %s445_s16 = sld [smem:[#allocation2]]  ;;  %v1648_v0 = vld [vmem:[%s379_s27] sm:$0xff]  ;;  %v1650_v1 = vld [vmem:[%s379_s27 + $0x8] sm:$0xff] }
  0xc0   : > { %s927_s20 = sld [smem:[#allocation7 + $0x80]]  ;;  %s928_s15 = sld [smem:[#allocation8 + $0x1]]  ;;  %v543_v15 = vmul.f32 %v1648_v0, %v1648_v0  ;;  %v549_v16 = vmul.f32 %v1650_v1, %v1650_v1 }
  0xc1   : > { %s446_s10 = sld [smem:[#allocation8]]  ;;  %s929_s29 = sld [smem:[#allocation10 + $0x1]] }
  0xc2   : > { %s448_s30 = sld [smem:[#allocation10]]  ;;  %s999_s22 = smul.u32 56, %s1624_s25  ;;  %v550_v21 = vadd.f32 %v549_v16, %v543_v15 }
  0xc3   : > { %s1683_s21 = sld [smem:[#allocation11]]  ;;  %s1685_s26 = sld [smem:[#allocation11 + $0x1]] }
  0xc4   : > { %s1658_s24 = scalar_lea.vmem [#allocation17], %s999_s22  ;;  %s1687_s27 = sld [smem:[#allocation11 + $0x2]] }
  0xc5   : > { %v527_v2 = vstv %s443_s18  ;;  %v532_v6 = vstv %s445_s16  ;;  %s1689_s18 = sld [smem:[#allocation11 + $0x3]]  ;;  %s1693_s16 = sld [smem:[#allocation11 + $0x5]] }
  0xc6   : > { %v528_v3 = vmul.f32 %v527_v2, %v1648_v0  ;;  %v529_v4 = vstv %s927_s20  ;;  %v538_v9 = vstv %s928_s15  ;;  %s1691_s20 = sld [smem:[#allocation11 + $0x4]]  ;;  %s1697_s15 = sld [smem:[#allocation11 + $0x7]] }
  0xc7   : > { %v530_v5 = vmul.f32 %v1650_v1, %v529_v4  ;;  %v534_v8 = vstv %s446_s10  ;;  %v540_v12 = vstv %s929_s29  ;;  %s1695_s10 = sld [smem:[#allocation11 + $0x6]]  ;;  %s1701_s29 = sld [smem:[#allocation11 + $0x80]] }
  0xc8   : > { %v536_v11 = vstv %s448_s30  ;;  %s1699_s30 = sld [smem:[#allocation11 + $0x8]]  ;;  %s1703_s22 = sld [smem:[#allocation11 + $0x81]] }
  0xc9   : > { %v531_v7 = vadd.f32 %v530_v5, %v528_v3  ;;  %s1705_s0 = sld [smem:[#allocation11 + $0x82]]  ;;  %s1707_s1 = sld [smem:[#allocation11 + $0x83]]  ;;  %v576_v29 = vstv %s1683_s21  ;;  %v589_v32 = vstv %s1685_s26 }
  0xca   : > { %s1709_s3 = sld [smem:[#allocation11 + $0x84]]  ;;  %s1711_s4 = sld [smem:[#allocation11 + $0x85]]  ;;  %v603_v33 = vstv %s1687_s27 }
  0xcb   : > { %v1655_v10 = vadd.f32 %v532_v6, %v531_v7  ;;  %s1713_s5 = sld [smem:[#allocation11 + $0x86]]  ;;  %s1715_s6 = sld [smem:[#allocation11 + $0x87]]  ;;  %v617_v38 = vstv %s1689_s18  ;;  %v645_v47 = vstv %s1693_s16 }
  0xcc   : > { %s1717_s7 = sld [smem:[#allocation11 + $0x88]]  ;;  %s1722_s19 = sld [smem:[#allocation11 + $0x101]]  ;;  %v631_v43 = vstv %s1691_s20  ;;  %v673_v58 = vstv %s1697_s15 }
  0xcd   : > { %v535_v13 = vmul.f32 %v534_v8, %v1655_v10  ;;  %990 = vst [vmem:[%s1658_s24 + $0x10] sm:$0xff] %v1655_v10  ;;  %v539_v14 = vmul.f32 %v538_v9, %v1655_v10  ;;  %s1720_s8 = sld [smem:[#allocation11 + $0x100]]  ;;  %s1726_s13 = sld [smem:[#allocation11 + $0x102]]  ;;  %v1739_v41 = vmul.f32 %v576_v29, %v1655_v10  ;;  %v1742_v42 = vmul.f32 %v589_v32, %v1655_v10 }
  0xce   : > { %s1728_s21 = sld [smem:[#allocation11 + $0x103]]  ;;  %s1730_s12 = sld [smem:[#allocation11 + $0x104]]  ;;  %v1752_v46 = vmul.f32 %v603_v33, %v1655_v10  ;;  %v618_v53 = vmul.f32 %v617_v38, %v1655_v10  ;;  %v632_v54 = vmul.f32 %v631_v43, %v1655_v10  ;;  %v659_v55 = vstv %s1695_s10 }
  0xcf   : > { %v1667_v17 = vadd.f32 %v536_v11, %v535_v13  ;;  %v1669_v18 = vadd.f32 %v540_v12, %v539_v14  ;;  %s1734_s26 = sld [smem:[#allocation11 + $0x105]]  ;;  %s1736_s27 = sld [smem:[#allocation11 + $0x106]]  ;;  %v578_v56 = vstv %s1701_s29  ;;  %v646_v57 = vmul.f32 %v645_v47, %v1655_v10 }
  0xd0   : > { %s1747_s18 = sld [smem:[#allocation11 + $0x107]]  ;;  %s1749_s2 = sld [smem:[#allocation13]]  ;;  %v591_v59 = vstv %s1703_s22  ;;  %v605_v60 = vstv %s1705_s0  ;;  %v619_v61 = vstv %s1707_s1  ;;  %v633_v62 = vstv %s1709_s3 }
  0xd1   : > { %v544_v19 = vmul.f32 %v1667_v17, %v1667_v17  ;;  %v545_v20 = vsub.f32 %v1648_v0, %v1667_v17  ;;  %724 = vst [vmem:[%s1658_s24] sm:$0xff] %v1667_v17  ;;  %989 = vst [vmem:[%s1658_s24 + $0x8] sm:$0xff] %v1669_v18  ;;  %v551_v22 = vmul.f32 %v1669_v18, %v1669_v18  ;;  %s1760_s20 = sld [smem:[#allocation13 + $0x1]]  ;;  %s1762_s23 = sld [smem:[#allocation13 + $0x2]]  ;;  %v661_v5 = vstv %s1713_s5 }
  0xd2   : > { %v553_v23 = vsub.f32 %v1650_v1, %v1669_v18  ;;  %v542_v48 = vmul.f32 %v1667_v17, %v1648_v0  ;;  %v547_v49 = vmul.f32 %v1650_v1, %v1669_v18  ;;  %s1766_s16 = sld [smem:[#allocation11 + $0x9]]  ;;  %s1771_s11 = sld [smem:[#allocation11 + $0x108]]  ;;  %v647_v1 = vstv %s1711_s4 }
  0xd3   : > { %v546_v24 = vmul.f32 %v545_v20, %v545_v20  ;;  %v552_v25 = vadd.f32 %v551_v22, %v544_v19  ;;  %s1773_s14 = sld [smem:[#allocation13 + $0x3]]  ;;  %s1780_s9 = sld [smem:[#allocation13 + $0x4]]  ;;  %v581_v0 = vstv %s1720_s8  ;;  %v660_v2 = vmul.f32 %v659_v55, %v1655_v10 }
  0xd4   : > { %v554_v26 = vmul.f32 %v553_v23, %v553_v23  ;;  %s1782_s10 = sld [smem:[#allocation13 + $0x5]]  ;;  %v548_v63 = vadd.f32 %v547_v49, %v542_v48  ;;  %s1788_s15 = sld [smem:[#allocation11 + $0x89]]  ;;  %v594_v3 = vstv %s1722_s19  ;;  %v608_v4 = vstv %s1726_s13 }
  0xd5   : > { %v556_v28 = vmul.f32 %v552_v25, %v550_v21  ;;  %v674_v6 = vmul.f32 %v673_v58, %v1655_v10  ;;  %v622_v7 = vstv %s1728_s21  ;;  %v636_v8 = vstv %s1730_s12  ;;  %s1817_s0 = sld [smem:[#allocation11 + $0x109]]  ;;  %s1823_s1 = sld [smem:[#allocation13 + $0x6]] }
  0xd6   : > { %v555_v27 = vadd.f32 %v554_v26, %v546_v24  ;;  %v650_v9 = vstv %s1734_s26  ;;  %v675_v11 = vstv %s1715_s6  ;;  %v584_v12 = vstv %s1749_s2  ;;  %s1833_s3 = sld [smem:[#allocation13 + $0x7]]  ;;  %s1835_s4 = sld [smem:[#allocation13 + $0x8]] }
  0xd7   : > { %1122 = vrsqrt.f32 %v556_v28  ;;  %vm559_vm0 = vcmp.eq.f32.partialorder %v556_v28, inf  ;;  %v562_v31 = vand.u32 2147483648, %v556_v28  ;;  %vm561_vm1 = vcmp.eq.f32.partialorder %v556_v28, 0.0  ;;  %s1837_s5 = sld [smem:[#allocation13 + $0x9]]  ;;  %s1840_s6 = sld [smem:[#allocation14]] }
  0xd8   : > { %1124 = vrsqrt.f32 %v555_v27  ;;  %vm569_vm2 = vcmp.eq.f32.partialorder %v555_v27, inf  ;;  %v572_v36 = vand.u32 2147483648, %v555_v27  ;;  %vm571_vm3 = vcmp.eq.f32.partialorder %v555_v27, 0.0  ;;  %s1844_s8 = sld [smem:[#allocation14 + $0x80]]  ;;  %s1850_s12 = sld [smem:[#allocation14 + $0x101]] }
  0xd9   : > { %1126 = vrsqrt.f32 %v550_v21  ;;  %v664_v13 = vstv %s1736_s27  ;;  %v687_v14 = vstv %s1699_s30  ;;  %v689_v15 = vstv %s1717_s7  ;;  %s1842_s7 = sld [smem:[#allocation14 + $0x1]]  ;;  %s1853_s13 = sld [smem:[#allocation14 + $0x180]] }
  0xda   : > { %v597_v17 = vstv %s1760_s20  ;;  %v611_v18 = vstv %s1762_s23  ;;  %v678_v19 = vstv %s1747_s18  ;;  %v701_v23 = vstv %s1766_s16  ;;  %s1858_s2 = sld [smem:[#allocation14 + $0x200]]  ;;  %s1860_s19 = sld [smem:[#allocation14 + $0x201]] }
  0xdb   : > { %v625_v24 = vstv %s1773_s14  ;;  %v653_v29 = vstv %s1782_s10  ;;  %s1855_s14 = sld [smem:[#allocation14 + $0x181]]  ;;  %s1862_s23 = sld [smem:[#allocation14 + $0x280]] }
  0xdc   : > { %s1864_s30 = sld [smem:[#allocation14 + $0x281]]  ;;  %s1869_s22 = sld [smem:[#allocation14 + $0x300]] }
  0xdd   : > { %s1874_s26 = sld [smem:[#allocation14 + $0x301]]  ;;  %s1878_s18 = sld [smem:[#allocation14 + $0x380]] }
  0xde   : > { %s1883_s16 = sld [smem:[#allocation14 + $0x381]]  ;;  %s1885_s10 = sld [smem:[#allocation14 + $0x400]] }
  0xdf   : > { %s492_s29 = ssub.f32 %s1840_s6, %s1842_s7  ;;  %s520_s7 = sld [smem:[#allocation16]] }
  0xe0   : > { %p2024_p8 = scmp.ne.s32.totalorder %s2007_s28, 0 }
  0xe1   : > { %v1123_v30 = vpop.eup %1122  ;;  %s501_s20 = ssub.f32 %s1853_s13, %s1855_s14  ;;  %s756_s13 = sshll.u32 %s1658_s24, 4  ;;  %s1907_s13 = int_to_ptr.vmem [resolvable:$true] %s756_s13 }
  0xe2   : > { %v1125_v34 = vpop.eup %1124  ;;  %v558_v35 = vmul.f32 %v1123_v30, %v556_v28  ;;  %v688_v30 = vmul.f32 %v687_v14, %v1655_v10  ;;  %v695_v14 = vstv %s1835_s4  ;;  %s1895_s4 = sld [smem:[#allocation14 + $0x481]]  ;;  %s1000_s14 = smul.u32 896, %s1463_s17 }
  0xe3   : > { %v568_v37 = vmul.f32 %v1125_v34, %v555_v27  ;;  %v1127_v39 = vpop.eup %1126  ;;  %s1383_s17 = smov [#allocation17]  }
  0xe4   : > { %v560_v40 = vsel %vm559_vm0, %v556_v28, %v558_v35  ;;  %v639_v28 = vstv %s1780_s9  ;;  %v702_v35 = vmul.f32 %v701_v23, %v1655_v10  ;;  %s1846_s9 = sld [smem:[#allocation14 + $0x81]]  ;;  %s513_s6 = ssub.f32 %s1878_s18, %s1883_s16 }
  0xe5   : > { %v563_v44 = vsel %vm561_vm1, %v562_v31, %v560_v40  ;;  %v570_v45 = vsel %vm569_vm2, %v555_v27, %v568_v37  ;;  %v692_v31 = vstv %s1771_s11  ;;  %s1848_s11 = sld [smem:[#allocation14 + $0x100]] }
  0xe6   : > { %v564_v50 = vmax.f32 %v563_v44, 1e-08  ;;  %v573_v51 = vsel %vm571_vm3, %v572_v36, %v570_v45  ;;  %v703_v36 = vstv %s1788_s15  ;;  %s504_s15 = ssub.f32 %s1858_s2, %s1860_s19 }
  0xe7   : > { %v1764_v52 = vmul.f32 %v1127_v39, %v573_v51 }
  0xe8   : > { %1128 = vrcp.f32 %v564_v50 }
  0xe9   : > { %991 = vst [vmem:[%s1658_s24 + $0x18] sm:$0xff] %v1764_v52  ;;  %v579_v16 = vmul.f32 %v578_v56, %v1764_v52  ;;  %v592_v20 = vmul.f32 %v591_v59, %v1764_v52  ;;  %v606_v21 = vmul.f32 %v605_v60, %v1764_v52  ;;  %v620_v22 = vmul.f32 %v619_v61, %v1764_v52 }
  0xea   : > { %v634_v25 = vmul.f32 %v633_v62, %v1764_v52  ;;  %v648_v26 = vmul.f32 %v647_v1, %v1764_v52  ;;  %v662_v27 = vmul.f32 %v661_v5, %v1764_v52  ;;  %v676_v34 = vmul.f32 %v675_v11, %v1764_v52  ;;  %s495_s21 = ssub.f32 %s1844_s8, %s1846_s9  ;;  %s987_s9 = sld [smem:[#allocation16 + $0x1]] }
  0xeb   : > { %v580_v33 = vadd.f32 %v579_v16, %v1739_v41  ;;  %v593_v38 = vadd.f32 %v592_v20, %v1742_v42  ;;  %v607_v39 = vadd.f32 %v606_v21, %v1752_v46  ;;  %v621_v40 = vadd.f32 %v620_v22, %v618_v53  ;;  %s498_s27 = ssub.f32 %s1848_s11, %s1850_s12 }
  0xec   : > { %v635_v43 = vadd.f32 %v634_v25, %v632_v54  ;;  %v649_v44 = vadd.f32 %v648_v26, %v646_v57  ;;  %v663_v45 = vadd.f32 %v662_v27, %v660_v2  ;;  %v690_v47 = vmul.f32 %v689_v15, %v1764_v52 }
  0xed   : > { %v704_v51 = vmul.f32 %v703_v36, %v1764_v52  ;;  %v677_v59 = vadd.f32 %v676_v34, %v674_v6  ;;  %v667_v2 = vstv %s1823_s1  ;;  %v681_v11 = vstv %s1833_s3  ;;  %s507_s1 = ssub.f32 %s1862_s23, %s1864_s30  ;;  %s1893_s3 = sld [smem:[#allocation14 + $0x480]] }
  0xee   : > { %v600_v20 = vstv %s495_s21  ;;  %v614_v23 = vstv %s498_s27  ;;  %v628_v26 = vstv %s501_s20  ;;  %s2023_s23 = sld [smem:[#allocation39_spill]]  ;;  %s1293_s21 = sshll.u32 %s1383_s17, 4  ;;  %s1294_s21 = int_to_ptr.vmem [resolvable:$false] %s1293_s21 }
  0xef   : > { %v705_v6 = vadd.f32 %v704_v51, %v702_v35  ;;  %v656_v36 = vstv %s507_s1  ;;  %p1296_p12 = scmp.lt.s32.totalorder %s1907_s13, %s1294_s21 }
  0xf0   : > { %s522_s12 = ssub.f32 %s520_s7, %s987_s9 }
  0xf2   : > { %v1129_v32 = vpop.eup %1128 }
  0xf3   : > { %v566_v37 = vmul.f32 %v1129_v32, %v548_v63  ;;  %v706_v63 = vstv %s1817_s0  ;;  %s1889_s0 = sld [smem:[#allocation14 + $0x401]]  ;;  %s519_s11 = ssub.f32 %s1893_s3, %s1895_s4 }
  0xf4   : > { %s1912_s30 = scalar_lea.hbm %s2023_s23, %s1000_s14 }
  0xf5   : > { %992 = vst [vmem:[%s1658_s24 + $0x20] sm:$0xff] %v566_v37  ;;  %v582_v41 = vmul.f32 %v581_v0, %v566_v37  ;;  %v595_v48 = vmul.f32 %v594_v3, %v566_v37  ;;  %v609_v49 = vmul.f32 %v608_v4, %v566_v37  ;;  %v623_v50 = vmul.f32 %v622_v7, %v566_v37 }
  0xf6   : > { %v637_v10 = vmul.f32 %v636_v8, %v566_v37  ;;  %v651_v42 = vmul.f32 %v650_v9, %v566_v37  ;;  %v665_v46 = vmul.f32 %v664_v13, %v566_v37  ;;  %v679_v60 = vmul.f32 %v678_v19, %v566_v37 }
  0xf7   : > { %v583_v53 = vadd.f32 %v582_v41, %v580_v33  ;;  %v596_v54 = vadd.f32 %v595_v48, %v593_v38  ;;  %v610_v55 = vadd.f32 %v609_v49, %v607_v39  ;;  %v624_v56 = vadd.f32 %v623_v50, %v621_v40 }
  0xf8   : > { %v638_v57 = vadd.f32 %v637_v10, %v635_v43  ;;  %v652_v58 = vadd.f32 %v651_v42, %v649_v44  ;;  %v666_v1 = vadd.f32 %v665_v46, %v663_v45  ;;  %v691_v3 = vadd.f32 %v690_v47, %v688_v30 }
  0xf9   : > { %v585_v52 = vadd.f32 %v584_v12, %v583_v53  ;;  %v598_v61 = vadd.f32 %v597_v17, %v596_v54  ;;  %v612_v62 = vadd.f32 %v611_v18, %v610_v55  ;;  %v626_v0 = vadd.f32 %v625_v24, %v624_v56  ;;  %s516_s8 = ssub.f32 %s1885_s10, %s1889_s0 }
  0xfa   : > { %v640_v4 = vadd.f32 %v639_v28, %v638_v57  ;;  %v693_v5 = vmul.f32 %v692_v31, %v566_v37  ;;  %v654_v7 = vadd.f32 %v653_v29, %v652_v58  ;;  %v680_v8 = vadd.f32 %v679_v60, %v677_v59 }
  0xfb   : > { %1130 = vtanh.f32 %v585_v52  ;;  %v707_v9 = vmul.f32 %v706_v63, %v566_v37  ;;  %v668_v12 = vadd.f32 %v667_v2, %v666_v1  ;;  %v709_v17 = vstv %s1837_s5  ;;  %s510_s5 = ssub.f32 %s1869_s22, %s1874_s26  ;;  %s1289_s22 = scalar_lea.vmem %s1907_s13, 896 }
  0xfc   : > { %1132 = vtanh.f32 %v598_v61  ;;  %v694_v13 = vadd.f32 %v693_v5, %v691_v3  ;;  %v682_v15 = vadd.f32 %v681_v11, %v680_v8  ;;  %v587_v19 = vstv %s492_s29  ;;  %s743_s29 = scalar_lea.sflag [#allocation5], %s1624_s25  ;;  %p1290_p6 = scmp.ne.s32.totalorder %s1907_s13, %s1289_s22 }
  0xfd   : > { %1134 = vtanh.f32 %v612_v62  ;;  %v708_v16 = vadd.f32 %v707_v9, %v705_v6  ;;  %v642_v31 = vstv %s504_s15  ;;  %v670_v40 = vstv %s510_s5  ;;  %s1295_s26 = scalar_lea.vmem %s1294_s21, 1792 }
  0xfe   : > { %1136 = vtanh.f32 %v626_v0  ;;  %v696_v18 = vadd.f32 %v695_v14, %v694_v13  ;;  %v684_v47 = vstv %s513_s6  ;;  %v698_v50 = vstv %s516_s8  ;;  %p1291_p10 = pnand %p1290_p6, %p2024_p8  ;;  %p1297_p7 = scmp.lt.s32.totalorder %s1295_s26, %s1289_s22 }
  0xff   : > { %1138 = vtanh.f32 %v640_v4  ;;  %v710_v21 = vadd.f32 %v709_v17, %v708_v16  ;;  %v712_v51 = vstv %s519_s11  ;;  %v715_v58 = vstv %s522_s12 }
 0x100   : > { %1140 = vtanh.f32 %v654_v7  ;;  %p1292_p11 = pneg %p1291_p10  ;;  %p1298_p5 = por %p1297_p7, %p1296_p12 }
 0x101   : > { %1142 = vtanh.f32 %v668_v12 }
 0x102   : > { %1144 = vtanh.f32 %v682_v15  ;;  %p1299_p2 = pnand %p1298_p5, %p1292_p11 }
 0x103   : > { %1146 = vtanh.f32 %v696_v18 }
 0x104   : > { %1148 = vtanh.f32 %v710_v21 }
 0x105   : > { %v1131_v22 = vpop.eup %1130 }
 0x106   : > { %v1133_v24 = vpop.eup %1132  ;;  %v588_v25 = vmul.f32 %v1131_v22, %v587_v19 }
 0x107   : > { %v1135_v27 = vpop.eup %1134  ;;  %v601_v28 = vmul.f32 %v1133_v24, %v600_v20 }
 0x108   : > { %v1137_v29 = vpop.eup %1136  ;;  %v615_v30 = vmul.f32 %v1135_v27, %v614_v23 }
 0x109   : > { %v1139_v32 = vpop.eup %1138  ;;  %v602_v33 = vadd.f32 %v601_v28, %v588_v25  ;;  %v629_v34 = vmul.f32 %v1137_v29, %v628_v26 }
 0x10a   : > { %v1141_v35 = vpop.eup %1140  ;;  %v643_v38 = vmul.f32 %v1139_v32, %v642_v31 }
 0x10b   : > { %v616_v37 = vadd.f32 %v615_v30, %v602_v33  ;;  %v1143_v39 = vpop.eup %1142  ;;  %v657_v44 = vmul.f32 %v1141_v35, %v656_v36 }
 0x10c   : > { %v1145_v45 = vpop.eup %1144  ;;  %v671_v48 = vmul.f32 %v1143_v39, %v670_v40 }
 0x10d   : > { %v630_v43 = vadd.f32 %v629_v34, %v616_v37  ;;  %v1147_v49 = vpop.eup %1146  ;;  %v685_v42 = vmul.f32 %v1145_v45, %v684_v47 }
 0x10e   : > { %v1149_v46 = vpop.eup %1148  ;;  %v699_v54 = vmul.f32 %v1147_v49, %v698_v50 }
 0x10f   : > { %v644_v41 = vadd.f32 %v643_v38, %v630_v43  ;;  %v713_v56 = vmul.f32 %v1149_v46, %v712_v51 }
 0x111   : > { %v658_v10 = vadd.f32 %v657_v44, %v644_v41 }
 0x113   : > { %v672_v53 = vadd.f32 %v671_v48, %v658_v10 }
 0x115   : > { %v686_v55 = vadd.f32 %v685_v42, %v672_v53 }
 0x117   : > { %v700_v57 = vadd.f32 %v699_v54, %v686_v55 }
 0x119   : > { %v714_v59 = vadd.f32 %v713_v56, %v700_v57 }
 0x11b   : > { %v716_v60 = vadd.f32 %v715_v58, %v714_v59 }
 0x11d   : > { %v717_v52 = vsub.f32 0.0, %v716_v60 }
 0x11f   : > { %v718_v61 = vmul.f32 1.442695, %v717_v52 }
 0x121   : > { %1150 = vpow2.f32 %v718_v61 }
 0x12b   : > { %v1151_v62 = vpop.eup %1150 }
 0x12c   : > { %v720_v63 = vadd.f32 1.0, %v1151_v62 }
 0x12e   : > { %1152 = vrcp.f32 %v720_v63 }
 0x138   : > { %v1153_v0 = vpop.eup %1152 }
 0x139   : > { %993 = vst [vmem:[%s1658_s24 + $0x28] sm:$0xff] %v1153_v0  ;;  %v723_v1 = vsub.f32 1.0, %v1153_v0 }
 0x13b   : > { %994 = vst [vmem:[%s1658_s24 + $0x30] sm:$0xff] %v723_v1 }
 0x13c   : > { %1302 = shalt.err (!%p1299_p2)
}
 0x13d   : > { %s1303_s24 = scalar_lea.hbm %s1912_s30, 896  ;;  %s1307_s20 = scalar_lea.hbm %s2023_s23, 7168 }
 0x13e   : > { %p1304_p4 = scmp.ne.s32.totalorder %s1912_s30, %s1303_s24  ;;  %p1308_p1 = scmp.lt.u32.totalorder %s1912_s30, %s2023_s23 }
 0x13f   : > { %p1309_p0 = scmp.lt.u32.totalorder %s1307_s20, %s1303_s24  ;;  %p1311_p6 = scmp.lt.u32.totalorder %s1303_s24, %s1912_s30 }
 0x140   : > { %p1305_p9 = pnand %p1304_p4, %p2024_p8 }
 0x141   : > { %p1310_p3 = por %p1309_p0, %p1308_p1 }
 0x142   : > { %p1306_p13 = pneg %p1305_p9 }
 0x143   : > { %p1312_p10 = por %p1311_p6, %p1310_p3 }
 0x145   : > { %p1313_p11 = pnand %p1312_p10, %p1306_p13 }
 0x147   : > { %1316 = shalt.err (!%p1313_p11)
}
 0x148   : > { %s1384_s15 = smov 128   ;;  %s1385_s0 = smov 8  }
 0x149   : > { %1031 = dma.vmem_to_hbm [thread:$0]  (%p2024_p8), %s1907_s13, 896, %s1912_s30, %s743_s29, %s1384_s15, %s1384_s15, %s1385_s0  }
 0x14a PF: > { %s2025_s1 = sld [smem:[#allocation27_spill]]  ;;  %s2026_s3 = sld [smem:[#allocation24_spill]] }
 0x14b   : > { %s2027_s4 = sld [smem:[#allocation30_spill]] }
 0x150   : > { %p1078_p12 = scmp.ge.s32.totalorder %s2025_s1, 2  ;;  %s771_s5 = sand.u32 1, %s2026_s3  }
 0x151   : > { %p2028_p7 = scmp.ne.s32.totalorder %s2027_s4, 0  ;;  %s772_s6 = scalar_lea.sflag [#allocation5], %s771_s5 }
 0x153   : > { %p1060_p5 = pnand %p1078_p12, %p2028_p7 }
 0x155   : > { %1354 = dma.done.wait (!%p1060_p5), %s772_s6, 896  }
 0x156   : > { %1356 = vsyncadd (!%p1060_p5), %s772_s6, 4294966400  ;;  %s2029_s14 = sld [smem:[#allocation28_spill]]  ;;  %s2030_s11 = sld [smem:[#allocation25_spill]] }
 0x157   : > { %s2031_s12 = sld [smem:[#allocation26_spill]]  ;;  %s2032_s13 = sld [smem:[#allocation29_spill]] }
 0x15c   : > { %p27_p2 = scmp.ge.s32.totalorder %s2029_s14, 10  }
 0x15e   :  { %29 = sbr.rel (!%p27_p2) target bundleno = 20 (0x14), region = 137 }
 0x165   :  { %777 = vsyncpa [#allocation4], 1 }
 0x166   :  { %779 = vsyncpa [#allocation4 + $0x1], 1 }
 0x167   :  { %780 = vsyncpa [#allocation5], 1 }
 0x168   :  { %782 = vsyncpa [#allocation5 + $0x1], 1 }
 0x169   :  { %783 = vsyncpa [#allocation6], 1 }
 0x16a   :  { %785 = vsyncpa [#allocation6 + $0x1], 1 }
 0x16b   :  { %786 = vsyncpa [#allocation9], 1 }
 0x16c   :  { %787 = vsyncpa [#allocation12], 1 }
 0x16d   :  { %788 = vsyncpa [#allocation15], 1 }

</bundles_post_ra>
